<compile_context>
chip_gen: v7x
topology: tpu7x:2x2x1
jax: 0.10.0
libtpu: 0.0.40
codegen_flags: <defaults>
</compile_context>

<pallas_src>
import functools
import math

import jax
import jax.numpy as jnp
import numpy as np
from jax.experimental import pallas as pl
from jax.experimental.pallas import tpu as pltpu

BN_EPS = 1e-5


def _reduce_nhw(v):
    """Sum an (N, H, W, C) value over (N, H, W) with keepdims, as three
    single-axis reductions."""
    v = jnp.sum(v, axis=2, keepdims=True)
    v = jnp.sum(v, axis=1, keepdims=True)
    return jnp.sum(v, axis=0, keepdims=True)


# ---------------------------------------------------------------------------
# Fused kernel: conv1 + BN + ReLU + maxpool + conv2 + BN + ReLU + avgpool
# ---------------------------------------------------------------------------
def _shallownet_kernel(lhs1_ref, w1_ref, w2_ref, o_ref, y1p_ref, lhs2_ref, *, dims):
    (n, c1, c2, oh1, ow1, ph1, pw1, oh2, ow2, ph2, pw2, gh2, w2p) = dims

    # ---------------- stage 1: conv 5x5 / stride 2 as ONE K-folded GEMM -----
    # lhs1 is the wrapper-built bf16 im2col matrix (K = 25*c_in), w1 is (K, c1).
    acc1 = jnp.dot(lhs1_ref[...], w1_ref[...],
                   preferred_element_type=jnp.float32)          # (m1, c1) f32

    # BatchNorm (training-mode batch stats, gamma=1, beta=0) + ReLU, f32,
    # centered (two-pass) variance.  Conv bias is exactly cancelled by BN.
    inv1 = 1.0 / float(n * oh1 * ow1)
    mu1 = jnp.sum(acc1, axis=0, keepdims=True) * inv1
    d1 = acc1 - mu1
    var1 = jnp.sum(d1 * d1, axis=0, keepdims=True) * inv1
    z1 = jnp.maximum(d1 * jax.lax.rsqrt(var1 + BN_EPS), 0.0)

    # 2x2 max pool, written into the zero-padded VMEM grid feeding stage 2
    # (never leaves VMEM).  H-pool via an 8-aligned reshape; W-pool per column.
    z1v = z1.reshape(n, ph1, 2, ow1, c1)
    zh = jnp.maximum(z1v[:, :, 0], z1v[:, :, 1])                # (n, ph1, ow1, c1)
    y1p_ref[...] = jnp.zeros(y1p_ref.shape, y1p_ref.dtype)
    for q in range(pw1):
        col = jnp.maximum(zh[:, :, 2 * q:2 * q + 1, :],
                          zh[:, :, 2 * q + 1:2 * q + 2, :])     # (n, ph1, 1, c1)
        y1p_ref[:, 1:1 + ph1, 1 + q:2 + q, :] = col

    # ---------------- stage 2: conv 3x3 / pad 1 as ONE K-folded GEMM --------
    # lhs2 rows are the full (n, gh2, w2p) padded grid (sublane-aligned, so the
    # per-tap reshape is a free tile-aligned merge); only the (oh2, ow2) window
    # of the matmul result is valid output, the rest is discarded.
    for t in range(9):
        dh, dw = t // 3, t % 3
        v = y1p_ref[:, dh:dh + gh2, dw:dw + w2p, :]             # (n, gh2, w2p, c1)
        lhs2_ref[:, t * c1:(t + 1) * c1] = v.reshape(n * gh2 * w2p, c1)

    b2m = jnp.dot(lhs2_ref[...].astype(jnp.bfloat16), w2_ref[...],
                  preferred_element_type=jnp.float32)           # (n*gh2*w2p, c2)
    acc2 = b2m.reshape(n, gh2, w2p, c2)[:, 0:oh2, 0:ow2, :]     # (n, oh2, ow2, c2)

    # BatchNorm + ReLU (centered variance), f32.
    inv2 = 1.0 / float(n * oh2 * ow2)
    mu2 = _reduce_nhw(acc2) * inv2
    d2 = acc2 - mu2
    var2 = _reduce_nhw(d2 * d2) * inv2
    z2 = jnp.maximum(d2 * jax.lax.rsqrt(var2 + BN_EPS), 0.0)

    # 2x2 average pool, stored to the output ref (pw2 = 2 column stores).
    z2v = z2.reshape(n, ph2, 2, ow2, c2)
    sh = z2v[:, :, 0] + z2v[:, :, 1]                            # (n, ph2, ow2, c2)
    for q in range(pw2):
        o_ref[:, :, q:q + 1, :] = (sh[:, :, 2 * q:2 * q + 1, :] +
                                   sh[:, :, 2 * q + 1:2 * q + 2, :]) * 0.25


# ---------------------------------------------------------------------------
# Forward pass (wrapper: NCHW <-> NHWC, im2col K-fold, bf16 weight repack)
# ---------------------------------------------------------------------------
def shallow_net_forward(x_nchw, params):
    w1, b1, w2, b2 = params           # torch-layout weights (O, I, KH, KW)
    del b1, b2                        # zero at init; cancelled by training-mode BN
    n, c_in, h, w = x_nchw.shape
    c1, c2 = w1.shape[0], w2.shape[0]
    assert h % 4 == 0 and w % 4 == 0, "spatial dims must be divisible by 4"

    oh1, ow1 = h // 2, w // 2          # conv1 (k5, s2, p2) output
    ph1, pw1 = oh1 // 2, ow1 // 2      # after 2x2 max pool
    oh2, ow2 = ph1, pw1                # conv2 (k3, s1, p1) output
    ph2, pw2 = oh2 // 2, ow2 // 2      # after 2x2 avg pool
    gh2 = oh2 + 2                      # stage-2 padded-grid height
    w2p = ((ow2 + 2 + 7) // 8) * 8     # stage-2 padded-grid width (8-aligned)

    x = jnp.transpose(x_nchw, (0, 2, 3, 1)).astype(jnp.float32)       # NHWC
    xp = jnp.pad(x, ((0, 0), (2, 2), (2, 2), (0, 0)))                 # pad=2
    # K-folded im2col for conv1: tap-major (kh, kw), channel-minor; bf16 MXU feed
    taps = [xp[:, dh:dh + 2 * oh1:2, dw:dw + 2 * ow1:2, :]
            for dh in range(5) for dw in range(5)]
    lhs1 = jnp.concatenate(taps, axis=-1).reshape(n * oh1 * ow1, 25 * c_in)
    lhs1 = lhs1.astype(jnp.bfloat16)

    # weights packed (KH, KW, I, O) -> (K, O) to match the im2col K ordering
    w1k = jnp.transpose(w1, (2, 3, 1, 0)).reshape(25 * c_in, c1).astype(jnp.bfloat16)
    w2k = jnp.transpose(w2, (2, 3, 1, 0)).reshape(9 * c1, c2).astype(jnp.bfloat16)

    dims = (n, c1, c2, oh1, ow1, ph1, pw1, oh2, ow2, ph2, pw2, gh2, w2p)
    out = pl.pallas_call(
        functools.partial(_shallownet_kernel, dims=dims),
        out_shape=jax.ShapeDtypeStruct((n, ph2, pw2, c2), jnp.float32),
        in_specs=[pl.BlockSpec(memory_space=pltpu.MemorySpace.VMEM)] * 3,
        out_specs=pl.BlockSpec(memory_space=pltpu.MemorySpace.VMEM),
        scratch_shapes=[
            pltpu.VMEM((n, gh2 + 2, w2p + 2, c1), jnp.float32),   # padded pooled grid
            pltpu.VMEM((n * gh2 * w2p, 9 * c1), jnp.float32),     # K-folded conv2 LHS
        ],
    )(lhs1, w1k, w2k)
    return jnp.transpose(out, (0, 3, 1, 2))                            # NCHW


# ---------------------------------------------------------------------------
# Pure-JAX reference (independent of the kernel path) for validation
# ---------------------------------------------------------------------------
def reference(x, w1, b1, w2, b2):
    def conv(z, wt, b, stride, pad):
        y = jax.lax.conv_general_dilated(
            z, wt, (stride, stride), [(pad, pad), (pad, pad)],
            dimension_numbers=("NCHW", "OIHW", "NCHW"))
        return y + b[None, :, None, None]

    def bn(z):
        mean = z.mean(axis=(0, 2, 3), keepdims=True)
        var = ((z - mean) ** 2).mean(axis=(0, 2, 3), keepdims=True)
        return (z - mean) / jnp.sqrt(var + BN_EPS)

    y = jnp.maximum(bn(conv(x, w1, b1, 2, 2)), 0.0)
    n, c, h, w = y.shape
    y = y.reshape(n, c, h // 2, 2, w // 2, 2).max(axis=(3, 5))
    y = jnp.maximum(bn(conv(y, w2, b2, 1, 1)), 0.0)
    n, c, h, w = y.shape
    y = y.reshape(n, c, h // 2, 2, w // 2, 2).mean(axis=(3, 5))
    return y


if __name__ == "__main__":
    key = jax.random.PRNGKey(0)
    kx, kw1, kw2 = jax.random.split(key, 3)

    # input: NCHW, batch=2, channels=4, spatial=16
    x = jax.random.normal(kx, (2, 4, 16, 16), dtype=jnp.float32)

    # deterministic init matching the module: uniform(-sqrt(2/(O*KH*KW)), +...)
    s1 = math.sqrt(2.0 / (16 * 5 * 5))
    w1 = jax.random.uniform(kw1, (16, 4, 5, 5), minval=-s1, maxval=s1,
                            dtype=jnp.float32)
    b1 = jnp.zeros((16,), jnp.float32)
    s2 = math.sqrt(2.0 / (16 * 3 * 3))
    w2 = jax.random.uniform(kw2, (16, 16, 3, 3), minval=-s2, maxval=s2,
                            dtype=jnp.float32)
    b2 = jnp.zeros((16,), jnp.float32)

    out = jax.jit(shallow_net_forward)(x, (w1, b1, w2, b2))
    out = jax.block_until_ready(out)
    assert out.shape == (2, 16, 2, 2), out.shape

    ref = jax.block_until_ready(reference(x, w1, b1, w2, b2))
    np.testing.assert_allclose(np.asarray(out), np.asarray(ref),
                               rtol=2e-2, atol=2e-2)
    print("KERNEL_OK")
</pallas_src>

<mosaic_0001>
module attributes {stable_mosaic.version = 11 : i64} {
  func.func @_shallownet_kernel(%arg0: memref<128x100xbf16, #tpu.memory_space<vmem>>, %arg1: memref<100x16xbf16, #tpu.memory_space<vmem>>, %arg2: memref<144x16xbf16, #tpu.memory_space<vmem>>, %arg3: memref<2x2x2x16xf32, #tpu.memory_space<vmem>>, %arg4: memref<2x8x10x16xf32, #tpu.memory_space<vmem>>, %arg5: memref<96x144xf32, #tpu.memory_space<vmem>>) attributes {dimension_semantics = [], scalar_prefetch = 0 : i64, scratch_operands = 2 : i64, tpu.core_type = #tpu.core_type<tc>} {
    %c0 = arith.constant 0 : index
    %c0_0 = arith.constant 0 : index
    %0 = vector.load %arg0[%c0, %c0_0] : memref<128x100xbf16, #tpu.memory_space<vmem>>, vector<128x100xbf16>
    %c0_1 = arith.constant 0 : index
    %c0_2 = arith.constant 0 : index
    %1 = vector.load %arg1[%c0_1, %c0_2] : memref<100x16xbf16, #tpu.memory_space<vmem>>, vector<100x16xbf16>
    %cst = arith.constant dense<0.000000e+00> : vector<128x16xf32>
    %2 = tpu.matmul %0, %1, %cst {dimension_numbers = #tpu.dot_dimension_numbers<[1], [0], [0], [1], [0, 0, 1, 1], [], []>} : vector<128x100xbf16>, vector<100x16xbf16>, vector<128x16xf32> -> vector<128x16xf32>
    %cst_3 = arith.constant dense<0.000000e+00> : vector<16xf32>
    %3 = vector.multi_reduction <add>, %2, %cst_3 [0] : vector<128x16xf32> to vector<16xf32>
    %4 = vector.shape_cast %3 : vector<16xf32> to vector<1x16xf32>
    %cst_4 = arith.constant 7.812500e-03 : f32
    %5 = vector.broadcast %cst_4 : f32 to vector<1x16xf32>
    %6 = arith.mulf %4, %5 : vector<1x16xf32>
    %7 = vector.broadcast %6 : vector<1x16xf32> to vector<128x16xf32>
    %8 = arith.subf %2, %7 : vector<128x16xf32>
    %9 = arith.mulf %8, %8 : vector<128x16xf32>
    %cst_5 = arith.constant dense<0.000000e+00> : vector<16xf32>
    %10 = vector.multi_reduction <add>, %9, %cst_5 [0] : vector<128x16xf32> to vector<16xf32>
    %11 = vector.shape_cast %10 : vector<16xf32> to vector<1x16xf32>
    %cst_6 = arith.constant 7.812500e-03 : f32
    %12 = vector.broadcast %cst_6 : f32 to vector<1x16xf32>
    %13 = arith.mulf %11, %12 : vector<1x16xf32>
    %cst_7 = arith.constant 9.99999974E-6 : f32
    %14 = vector.broadcast %cst_7 : f32 to vector<1x16xf32>
    %15 = arith.addf %13, %14 : vector<1x16xf32>
    %16 = math.rsqrt %15 : vector<1x16xf32>
    %17 = vector.broadcast %16 : vector<1x16xf32> to vector<128x16xf32>
    %18 = arith.mulf %8, %17 : vector<128x16xf32>
    %cst_8 = arith.constant 0.000000e+00 : f32
    %19 = vector.broadcast %cst_8 : f32 to vector<128x16xf32>
    %20 = arith.maximumf %18, %19 : vector<128x16xf32>
    %21 = vector.shape_cast %20 : vector<128x16xf32> to vector<2x4x2x8x16xf32>
    %22 = vector.extract_strided_slice %21 {offsets = [0, 0, 0, 0, 0], sizes = [2, 4, 1, 8, 16], strides = [1, 1, 1, 1, 1]} : vector<2x4x2x8x16xf32> to vector<2x4x1x8x16xf32>
    %23 = vector.shape_cast %22 : vector<2x4x1x8x16xf32> to vector<2x4x8x16xf32>
    %24 = vector.extract_strided_slice %21 {offsets = [0, 0, 1, 0, 0], sizes = [2, 4, 1, 8, 16], strides = [1, 1, 1, 1, 1]} : vector<2x4x2x8x16xf32> to vector<2x4x1x8x16xf32>
    %25 = vector.shape_cast %24 : vector<2x4x1x8x16xf32> to vector<2x4x8x16xf32>
    %26 = arith.maximumf %23, %25 : vector<2x4x8x16xf32>
    %cst_9 = arith.constant 0.000000e+00 : f32
    %27 = vector.broadcast %cst_9 : f32 to vector<2x8x10x16xf32>
    %c0_10 = arith.constant 0 : index
    %c0_11 = arith.constant 0 : index
    %c0_12 = arith.constant 0 : index
    %c0_13 = arith.constant 0 : index
    %28 = vector.load %arg4[%c0_10, %c0_11, %c0_12, %c0_13] : memref<2x8x10x16xf32, #tpu.memory_space<vmem>>, vector<2x8x10x16xf32>
    tpu.vector_store %arg4[%c0_10, %c0_11, %c0_12, %c0_13], %27 {strides = array<i32>} : memref<2x8x10x16xf32, #tpu.memory_space<vmem>>, vector<2x8x10x16xf32>,
    %29 = vector.extract_strided_slice %26 {offsets = [0, 0, 0, 0], sizes = [2, 4, 1, 16], strides = [1, 1, 1, 1]} : vector<2x4x8x16xf32> to vector<2x4x1x16xf32>
    %30 = vector.extract_strided_slice %26 {offsets = [0, 0, 1, 0], sizes = [2, 4, 1, 16], strides = [1, 1, 1, 1]} : vector<2x4x8x16xf32> to vector<2x4x1x16xf32>
    %31 = arith.maximumf %29, %30 : vector<2x4x1x16xf32>
    %c0_14 = arith.constant 0 : index
    %c1 = arith.constant 1 : index
    %c1_15 = arith.constant 1 : index
    %c0_16 = arith.constant 0 : index
    %32 = vector.load %arg4[%c0_14, %c1, %c1_15, %c0_16] : memref<2x8x10x16xf32, #tpu.memory_space<vmem>>, vector<2x4x1x16xf32>
    tpu.vector_store %arg4[%c0_14, %c1, %c1_15, %c0_16], %31 {strides = array<i32>} : memref<2x8x10x16xf32, #tpu.memory_space<vmem>>, vector<2x4x1x16xf32>,
    %33 = vector.extract_strided_slice %26 {offsets = [0, 0, 2, 0], sizes = [2, 4, 1, 16], strides = [1, 1, 1, 1]} : vector<2x4x8x16xf32> to vector<2x4x1x16xf32>
    %34 = vector.extract_strided_slice %26 {offsets = [0, 0, 3, 0], sizes = [2, 4, 1, 16], strides = [1, 1, 1, 1]} : vector<2x4x8x16xf32> to vector<2x4x1x16xf32>
    %35 = arith.maximumf %33, %34 : vector<2x4x1x16xf32>
    %c0_17 = arith.constant 0 : index
    %c1_18 = arith.constant 1 : index
    %c2 = arith.constant 2 : index
    %c0_19 = arith.constant 0 : index
    %36 = vector.load %arg4[%c0_17, %c1_18, %c2, %c0_19] : memref<2x8x10x16xf32, #tpu.memory_space<vmem>>, vector<2x4x1x16xf32>
    tpu.vector_store %arg4[%c0_17, %c1_18, %c2, %c0_19], %35 {strides = array<i32>} : memref<2x8x10x16xf32, #tpu.memory_space<vmem>>, vector<2x4x1x16xf32>,
    %37 = vector.extract_strided_slice %26 {offsets = [0, 0, 4, 0], sizes = [2, 4, 1, 16], strides = [1, 1, 1, 1]} : vector<2x4x8x16xf32> to vector<2x4x1x16xf32>
    %38 = vector.extract_strided_slice %26 {offsets = [0, 0, 5, 0], sizes = [2, 4, 1, 16], strides = [1, 1, 1, 1]} : vector<2x4x8x16xf32> to vector<2x4x1x16xf32>
    %39 = arith.maximumf %37, %38 : vector<2x4x1x16xf32>
    %c0_20 = arith.constant 0 : index
    %c1_21 = arith.constant 1 : index
    %c3 = arith.constant 3 : index
    %c0_22 = arith.constant 0 : index
    %40 = vector.load %arg4[%c0_20, %c1_21, %c3, %c0_22] : memref<2x8x10x16xf32, #tpu.memory_space<vmem>>, vector<2x4x1x16xf32>
    tpu.vector_store %arg4[%c0_20, %c1_21, %c3, %c0_22], %39 {strides = array<i32>} : memref<2x8x10x16xf32, #tpu.memory_space<vmem>>, vector<2x4x1x16xf32>,
    %41 = vector.extract_strided_slice %26 {offsets = [0, 0, 6, 0], sizes = [2, 4, 1, 16], strides = [1, 1, 1, 1]} : vector<2x4x8x16xf32> to vector<2x4x1x16xf32>
    %42 = vector.extract_strided_slice %26 {offsets = [0, 0, 7, 0], sizes = [2, 4, 1, 16], strides = [1, 1, 1, 1]} : vector<2x4x8x16xf32> to vector<2x4x1x16xf32>
    %43 = arith.maximumf %41, %42 : vector<2x4x1x16xf32>
    %c0_23 = arith.constant 0 : index
    %c1_24 = arith.constant 1 : index
    %c4 = arith.constant 4 : index
    %c0_25 = arith.constant 0 : index
    %44 = vector.load %arg4[%c0_23, %c1_24, %c4, %c0_25] : memref<2x8x10x16xf32, #tpu.memory_space<vmem>>, vector<2x4x1x16xf32>
    tpu.vector_store %arg4[%c0_23, %c1_24, %c4, %c0_25], %43 {strides = array<i32>} : memref<2x8x10x16xf32, #tpu.memory_space<vmem>>, vector<2x4x1x16xf32>,
    %c0_26 = arith.constant 0 : index
    %c0_27 = arith.constant 0 : index
    %c0_28 = arith.constant 0 : index
    %c0_29 = arith.constant 0 : index
    %45 = vector.load %arg4[%c0_26, %c0_27, %c0_28, %c0_29] : memref<2x8x10x16xf32, #tpu.memory_space<vmem>>, vector<2x6x8x16xf32>
    %46 = vector.shape_cast %45 : vector<2x6x8x16xf32> to vector<96x16xf32>
    %c0_30 = arith.constant 0 : index
    %c0_31 = arith.constant 0 : index
    %47 = vector.load %arg5[%c0_30, %c0_31] : memref<96x144xf32, #tpu.memory_space<vmem>>, vector<96x16xf32>
    tpu.vector_store %arg5[%c0_30, %c0_31], %46 {strides = array<i32>} : memref<96x144xf32, #tpu.memory_space<vmem>>, vector<96x16xf32>,
    %c0_32 = arith.constant 0 : index
    %c0_33 = arith.constant 0 : index
    %c1_34 = arith.constant 1 : index
    %c0_35 = arith.constant 0 : index
    %48 = vector.load %arg4[%c0_32, %c0_33, %c1_34, %c0_35] : memref<2x8x10x16xf32, #tpu.memory_space<vmem>>, vector<2x6x8x16xf32>
    %49 = vector.shape_cast %48 : vector<2x6x8x16xf32> to vector<96x16xf32>
    %c0_36 = arith.constant 0 : index
    %c16 = arith.constant 16 : index
    %50 = vector.load %arg5[%c0_36, %c16] : memref<96x144xf32, #tpu.memory_space<vmem>>, vector<96x16xf32>
    tpu.vector_store %arg5[%c0_36, %c16], %49 {strides = array<i32>} : memref<96x144xf32, #tpu.memory_space<vmem>>, vector<96x16xf32>,
    %c0_37 = arith.constant 0 : index
    %c0_38 = arith.constant 0 : index
    %c2_39 = arith.constant 2 : index
    %c0_40 = arith.constant 0 : index
    %51 = vector.load %arg4[%c0_37, %c0_38, %c2_39, %c0_40] : memref<2x8x10x16xf32, #tpu.memory_space<vmem>>, vector<2x6x8x16xf32>
    %52 = vector.shape_cast %51 : vector<2x6x8x16xf32> to vector<96x16xf32>
    %c0_41 = arith.constant 0 : index
    %c32 = arith.constant 32 : index
    %53 = vector.load %arg5[%c0_41, %c32] : memref<96x144xf32, #tpu.memory_space<vmem>>, vector<96x16xf32>
    tpu.vector_store %arg5[%c0_41, %c32], %52 {strides = array<i32>} : memref<96x144xf32, #tpu.memory_space<vmem>>, vector<96x16xf32>,
    %c0_42 = arith.constant 0 : index
    %c1_43 = arith.constant 1 : index
    %c0_44 = arith.constant 0 : index
    %c0_45 = arith.constant 0 : index
    %54 = vector.load %arg4[%c0_42, %c1_43, %c0_44, %c0_45] : memref<2x8x10x16xf32, #tpu.memory_space<vmem>>, vector<2x6x8x16xf32>
    %55 = vector.shape_cast %54 : vector<2x6x8x16xf32> to vector<96x16xf32>
    %c0_46 = arith.constant 0 : index
    %c48 = arith.constant 48 : index
    %56 = vector.load %arg5[%c0_46, %c48] : memref<96x144xf32, #tpu.memory_space<vmem>>, vector<96x16xf32>
    tpu.vector_store %arg5[%c0_46, %c48], %55 {strides = array<i32>} : memref<96x144xf32, #tpu.memory_space<vmem>>, vector<96x16xf32>,
    %c0_47 = arith.constant 0 : index
    %c1_48 = arith.constant 1 : index
    %c1_49 = arith.constant 1 : index
    %c0_50 = arith.constant 0 : index
    %57 = vector.load %arg4[%c0_47, %c1_48, %c1_49, %c0_50] : memref<2x8x10x16xf32, #tpu.memory_space<vmem>>, vector<2x6x8x16xf32>
    %58 = vector.shape_cast %57 : vector<2x6x8x16xf32> to vector<96x16xf32>
    %c0_51 = arith.constant 0 : index
    %c64 = arith.constant 64 : index
    %59 = vector.load %arg5[%c0_51, %c64] : memref<96x144xf32, #tpu.memory_space<vmem>>, vector<96x16xf32>
    tpu.vector_store %arg5[%c0_51, %c64], %58 {strides = array<i32>} : memref<96x144xf32, #tpu.memory_space<vmem>>, vector<96x16xf32>,
    %c0_52 = arith.constant 0 : index
    %c1_53 = arith.constant 1 : index
    %c2_54 = arith.constant 2 : index
    %c0_55 = arith.constant 0 : index
    %60 = vector.load %arg4[%c0_52, %c1_53, %c2_54, %c0_55] : memref<2x8x10x16xf32, #tpu.memory_space<vmem>>, vector<2x6x8x16xf32>
    %61 = vector.shape_cast %60 : vector<2x6x8x16xf32> to vector<96x16xf32>
    %c0_56 = arith.constant 0 : index
    %c80 = arith.constant 80 : index
    %62 = vector.load %arg5[%c0_56, %c80] : memref<96x144xf32, #tpu.memory_space<vmem>>, vector<96x16xf32>
    tpu.vector_store %arg5[%c0_56, %c80], %61 {strides = array<i32>} : memref<96x144xf32, #tpu.memory_space<vmem>>, vector<96x16xf32>,
    %c0_57 = arith.constant 0 : index
    %c2_58 = arith.constant 2 : index
    %c0_59 = arith.constant 0 : index
    %c0_60 = arith.constant 0 : index
    %63 = vector.load %arg4[%c0_57, %c2_58, %c0_59, %c0_60] : memref<2x8x10x16xf32, #tpu.memory_space<vmem>>, vector<2x6x8x16xf32>
    %64 = vector.shape_cast %63 : vector<2x6x8x16xf32> to vector<96x16xf32>
    %c0_61 = arith.constant 0 : index
    %c96 = arith.constant 96 : index
    %65 = vector.load %arg5[%c0_61, %c96] : memref<96x144xf32, #tpu.memory_space<vmem>>, vector<96x16xf32>
    tpu.vector_store %arg5[%c0_61, %c96], %64 {strides = array<i32>} : memref<96x144xf32, #tpu.memory_space<vmem>>, vector<96x16xf32>,
    %c0_62 = arith.constant 0 : index
    %c2_63 = arith.constant 2 : index
    %c1_64 = arith.constant 1 : index
    %c0_65 = arith.constant 0 : index
    %66 = vector.load %arg4[%c0_62, %c2_63, %c1_64, %c0_65] : memref<2x8x10x16xf32, #tpu.memory_space<vmem>>, vector<2x6x8x16xf32>
    %67 = vector.shape_cast %66 : vector<2x6x8x16xf32> to vector<96x16xf32>
    %c0_66 = arith.constant 0 : index
    %c112 = arith.constant 112 : index
    %68 = vector.load %arg5[%c0_66, %c112] : memref<96x144xf32, #tpu.memory_space<vmem>>, vector<96x16xf32>
    tpu.vector_store %arg5[%c0_66, %c112], %67 {strides = array<i32>} : memref<96x144xf32, #tpu.memory_space<vmem>>, vector<96x16xf32>,
    %c0_67 = arith.constant 0 : index
    %c2_68 = arith.constant 2 : index
    %c2_69 = arith.constant 2 : index
    %c0_70 = arith.constant 0 : index
    %69 = vector.load %arg4[%c0_67, %c2_68, %c2_69, %c0_70] : memref<2x8x10x16xf32, #tpu.memory_space<vmem>>, vector<2x6x8x16xf32>
    %70 = vector.shape_cast %69 : vector<2x6x8x16xf32> to vector<96x16xf32>
    %c0_71 = arith.constant 0 : index
    %c128 = arith.constant 128 : index
    %71 = vector.load %arg5[%c0_71, %c128] : memref<96x144xf32, #tpu.memory_space<vmem>>, vector<96x16xf32>
    tpu.vector_store %arg5[%c0_71, %c128], %70 {strides = array<i32>} : memref<96x144xf32, #tpu.memory_space<vmem>>, vector<96x16xf32>,
    %c0_72 = arith.constant 0 : index
    %c0_73 = arith.constant 0 : index
    %72 = vector.load %arg5[%c0_72, %c0_73] : memref<96x144xf32, #tpu.memory_space<vmem>>, vector<96x144xf32>
    %73 = arith.truncf %72 : vector<96x144xf32> to vector<96x144xbf16>
    %c0_74 = arith.constant 0 : index
    %c0_75 = arith.constant 0 : index
    %74 = vector.load %arg2[%c0_74, %c0_75] : memref<144x16xbf16, #tpu.memory_space<vmem>>, vector<144x16xbf16>
    %cst_76 = arith.constant dense<0.000000e+00> : vector<96x16xf32>
    %75 = tpu.matmul %73, %74, %cst_76 {dimension_numbers = #tpu.dot_dimension_numbers<[1], [0], [0], [1], [0, 0, 1, 1], [], []>} : vector<96x144xbf16>, vector<144x16xbf16>, vector<96x16xf32> -> vector<96x16xf32>
    %76 = vector.shape_cast %75 : vector<96x16xf32> to vector<2x6x8x16xf32>
    %77 = vector.extract_strided_slice %76 {offsets = [0, 0, 0, 0], sizes = [2, 4, 4, 16], strides = [1, 1, 1, 1]} : vector<2x6x8x16xf32> to vector<2x4x4x16xf32>
    %cst_77 = arith.constant dense<0.000000e+00> : vector<2x4x16xf32>
    %78 = vector.multi_reduction <add>, %77, %cst_77 [2] : vector<2x4x4x16xf32> to vector<2x4x16xf32>
    %79 = vector.shape_cast %78 : vector<2x4x16xf32> to vector<2x4x1x16xf32>
    %cst_78 = arith.constant dense<0.000000e+00> : vector<2x1x16xf32>
    %80 = vector.multi_reduction <add>, %79, %cst_78 [1] : vector<2x4x1x16xf32> to vector<2x1x16xf32>
    %81 = vector.shape_cast %80 : vector<2x1x16xf32> to vector<2x1x1x16xf32>
    %cst_79 = arith.constant dense<0.000000e+00> : vector<1x1x16xf32>
    %82 = vector.multi_reduction <add>, %81, %cst_79 [0] : vector<2x1x1x16xf32> to vector<1x1x16xf32>
    %83 = vector.shape_cast %82 : vector<1x1x16xf32> to vector<1x1x1x16xf32>
    %cst_80 = arith.constant 3.125000e-02 : f32
    %84 = vector.broadcast %cst_80 : f32 to vector<1x1x1x16xf32>
    %85 = arith.mulf %83, %84 : vector<1x1x1x16xf32>
    %86 = vector.broadcast %85 : vector<1x1x1x16xf32> to vector<2x4x4x16xf32>
    %87 = arith.subf %77, %86 : vector<2x4x4x16xf32>
    %88 = arith.mulf %87, %87 : vector<2x4x4x16xf32>
    %cst_81 = arith.constant dense<0.000000e+00> : vector<2x4x16xf32>
    %89 = vector.multi_reduction <add>, %88, %cst_81 [2] : vector<2x4x4x16xf32> to vector<2x4x16xf32>
    %90 = vector.shape_cast %89 : vector<2x4x16xf32> to vector<2x4x1x16xf32>
    %cst_82 = arith.constant dense<0.000000e+00> : vector<2x1x16xf32>
    %91 = vector.multi_reduction <add>, %90, %cst_82 [1] : vector<2x4x1x16xf32> to vector<2x1x16xf32>
    %92 = vector.shape_cast %91 : vector<2x1x16xf32> to vector<2x1x1x16xf32>
    %cst_83 = arith.constant dense<0.000000e+00> : vector<1x1x16xf32>
    %93 = vector.multi_reduction <add>, %92, %cst_83 [0] : vector<2x1x1x16xf32> to vector<1x1x16xf32>
    %94 = vector.shape_cast %93 : vector<1x1x16xf32> to vector<1x1x1x16xf32>
    %cst_84 = arith.constant 3.125000e-02 : f32
    %95 = vector.broadcast %cst_84 : f32 to vector<1x1x1x16xf32>
    %96 = arith.mulf %94, %95 : vector<1x1x1x16xf32>
    %cst_85 = arith.constant 9.99999974E-6 : f32
    %97 = vector.broadcast %cst_85 : f32 to vector<1x1x1x16xf32>
    %98 = arith.addf %96, %97 : vector<1x1x1x16xf32>
    %99 = math.rsqrt %98 : vector<1x1x1x16xf32>
    %100 = vector.broadcast %99 : vector<1x1x1x16xf32> to vector<2x4x4x16xf32>
    %101 = arith.mulf %87, %100 : vector<2x4x4x16xf32>
    %cst_86 = arith.constant 0.000000e+00 : f32
    %102 = vector.broadcast %cst_86 : f32 to vector<2x4x4x16xf32>
    %103 = arith.maximumf %101, %102 : vector<2x4x4x16xf32>
    %104 = vector.shape_cast %103 : vector<2x4x4x16xf32> to vector<2x2x2x4x16xf32>
    %105 = vector.extract_strided_slice %104 {offsets = [0, 0, 0, 0, 0], sizes = [2, 2, 1, 4, 16], strides = [1, 1, 1, 1, 1]} : vector<2x2x2x4x16xf32> to vector<2x2x1x4x16xf32>
    %106 = vector.shape_cast %105 : vector<2x2x1x4x16xf32> to vector<2x2x4x16xf32>
    %107 = vector.extract_strided_slice %104 {offsets = [0, 0, 1, 0, 0], sizes = [2, 2, 1, 4, 16], strides = [1, 1, 1, 1, 1]} : vector<2x2x2x4x16xf32> to vector<2x2x1x4x16xf32>
    %108 = vector.shape_cast %107 : vector<2x2x1x4x16xf32> to vector<2x2x4x16xf32>
    %109 = arith.addf %106, %108 : vector<2x2x4x16xf32>
    %110 = vector.extract_strided_slice %109 {offsets = [0, 0, 0, 0], sizes = [2, 2, 1, 16], strides = [1, 1, 1, 1]} : vector<2x2x4x16xf32> to vector<2x2x1x16xf32>
    %111 = vector.extract_strided_slice %109 {offsets = [0, 0, 1, 0], sizes = [2, 2, 1, 16], strides = [1, 1, 1, 1]} : vector<2x2x4x16xf32> to vector<2x2x1x16xf32>
    %112 = arith.addf %110, %111 : vector<2x2x1x16xf32>
    %cst_87 = arith.constant 2.500000e-01 : f32
    %113 = vector.broadcast %cst_87 : f32 to vector<2x2x1x16xf32>
    %114 = arith.mulf %112, %113 : vector<2x2x1x16xf32>
    %c0_88 = arith.constant 0 : index
    %c0_89 = arith.constant 0 : index
    %c0_90 = arith.constant 0 : index
    %c0_91 = arith.constant 0 : index
    %115 = vector.load %arg3[%c0_88, %c0_89, %c0_90, %c0_91] : memref<2x2x2x16xf32, #tpu.memory_space<vmem>>, vector<2x2x1x16xf32>
    tpu.vector_store %arg3[%c0_88, %c0_89, %c0_90, %c0_91], %114 {strides = array<i32>} : memref<2x2x2x16xf32, #tpu.memory_space<vmem>>, vector<2x2x1x16xf32>,
    %116 = vector.extract_strided_slice %109 {offsets = [0, 0, 2, 0], sizes = [2, 2, 1, 16], strides = [1, 1, 1, 1]} : vector<2x2x4x16xf32> to vector<2x2x1x16xf32>
    %117 = vector.extract_strided_slice %109 {offsets = [0, 0, 3, 0], sizes = [2, 2, 1, 16], strides = [1, 1, 1, 1]} : vector<2x2x4x16xf32> to vector<2x2x1x16xf32>
    %118 = arith.addf %116, %117 : vector<2x2x1x16xf32>
    %cst_92 = arith.constant 2.500000e-01 : f32
    %119 = vector.broadcast %cst_92 : f32 to vector<2x2x1x16xf32>
    %120 = arith.mulf %118, %119 : vector<2x2x1x16xf32>
    %c0_93 = arith.constant 0 : index
    %c0_94 = arith.constant 0 : index
    %c1_95 = arith.constant 1 : index
    %c0_96 = arith.constant 0 : index
    %121 = vector.load %arg3[%c0_93, %c0_94, %c1_95, %c0_96] : memref<2x2x2x16xf32, #tpu.memory_space<vmem>>, vector<2x2x1x16xf32>
    tpu.vector_store %arg3[%c0_93, %c0_94, %c1_95, %c0_96], %120 {strides = array<i32>} : memref<2x2x2x16xf32, #tpu.memory_space<vmem>>, vector<2x2x1x16xf32>,
    return
  }
}

</mosaic_0001>

<bundles_post_ra>
// kernel: shallow_net_forward.1
= control target key start
LH: loop header
LB: loop body
LE: loop exit
PB: predicated region body
PF: predicated region fallthrough
CT: control target
= control target key end

     0   :  { %vm124_vm0 = vcmask 818176   ;;  %s2403_s0 = inlined_call_operand.vmem [shape: bf16[128,100], index: 0, kind: input, shape index: {}]   ;;  %s2404_s1 = inlined_call_operand.vmem [shape: bf16[100,16], index: 1, kind: input, shape index: {}]   ;;  %s2405_s2 = inlined_call_operand.vmem [shape: bf16[144,16], index: 2, kind: input, shape index: {}]   ;;  %s2406_s3 = inlined_call_operand.hbm [shape: f32[2,2,2,16], index: 3, kind: output, shape index: {}]  }
   0x1   :  { %v1610_v0 = vld [vmem:[%s2404_s1] sm:$0xff]   ;;  %v1611_v1 = vld [vmem:[%s2404_s1 + $0x8] sm:$0xff]   ;;  %v1612_v2 = vld [vmem:[%s2404_s1 + $0x10] sm:$0xff]  }
   0x2   :  { %1550 = vmatprep.subr.bf16.mxu0 %v1610_v0  ;;  %v1617_v3 = vld [vmem:[%s2403_s0] sm:$0xff]   ;;  %v1613_v4 = vld [vmem:[%s2404_s1 + $0x18] sm:$0xff]   ;;  %v1615_v6 = vld [vmem:[%s2404_s1 + $0x28] sm:$0xff]  }
   0x3   :  { %1551 = vmatpush3.bf16.msra.mxu0 %v1610_v0  ;;  %1564 = vmatprep.mubr.msk.bf16.mxu0 %vm124_vm0, %v1617_v3  ;;  %v1614_v5 = vld [vmem:[%s2404_s1 + $0x20] sm:$0xff]   ;;  %v1616_v7 = vld [vmem:[%s2404_s1 + $0x30] ss:$0 sps:$4 sm:$0x33]  }
   0x4   :  { %1552 = vmatprep.subr.bf16.mxu0 %v1611_v1 }
   0x7   :  { %1553 = vmatpush3.bf16.msra.mxu0 %v1611_v1 }
   0x8   :  { %1554 = vmatprep.subr.bf16.mxu0 %v1612_v2 }
   0xb   :  { %1555 = vmatpush3.bf16.msra.mxu0 %v1612_v2 }
   0xc   :  { %1556 = vmatprep.subr.bf16.mxu0 %v1613_v4 }
   0xf   :  { %1557 = vmatpush3.bf16.msra.mxu0 %v1613_v4 }
  0x10   :  { %1558 = vmatprep.subr.bf16.mxu0 %v1614_v5 }
  0x13   :  { %1559 = vmatpush3.bf16.msra.mxu0 %v1614_v5 }
  0x14   :  { %1560 = vmatprep.subr.bf16.mxu0 %v1615_v6 }
  0x15   :  { %8 = vsyncpa [#allocation5], 0  ;;  %vm149_vm1 = vcmask 1041408   ;;  %v1618_v9 = vld [vmem:[%s2403_s0 + $0x8] sm:$0xff]   ;;  %v1619_v10 = vld [vmem:[%s2403_s0 + $0x10] sm:$0xff]   ;;  %vm250_vm2 = vcmask 130048  }
  0x16   :  { %v151_v8 = vsel %vm149_vm1, %v1616_v7, 0  ;;  %v1620_v11 = vld [vmem:[%s2403_s0 + $0x18] sm:$0xff]   ;;  %v1621_v12 = vld [vmem:[%s2403_s0 + $0x20] sm:$0xff]   ;;  %v1622_v13 = vld [vmem:[%s2403_s0 + $0x28] sm:$0xff]   ;;  %v1662_v16 = vmov 0.0   ;;  %vm402_vm3 = vcmask 123904  }
  0x17   :  { %1561 = vmatpush3.bf16.msra.mxu0 %v1615_v6  ;;  %v1623_v14 = vld [vmem:[%s2403_s0 + $0x30] sm:$0xff]   ;;  %v1624_v15 = vld [vmem:[%s2403_s0 + $0x38] sm:$0xff]   ;;  %422 = vst.msk [vmem:[#allocation2 + $0xa0] sm:$0xff] %vm250_vm2, %v1662_v16  ;;  %424 = vst.msk [vmem:[#allocation2 + $0xb0] sm:$0xff] %vm250_vm2, %v1662_v16  ;;  %s1663_s0 = smov 96   ;;  %s1664_s14 = smov 112  }
  0x18   :  { %1598 = vmatprep.subr.msk.bf16.mxu0 %vm149_vm1, %v1616_v7  ;;  %426 = vst.msk [vmem:[#allocation2 + $0xc0] sm:$0xff] %vm250_vm2, %v1662_v16  ;;  %401 = vst.msk [vmem:[#allocation2] sm:$0xff] %vm250_vm2, %v1662_v16  ;;  %s1665_s15 = smov 48   ;;  %s1666_s16 = smov 64   ;;  %vm587_vm4 = vcmask 261248   ;;  %vm660_vm5 = vcmask 392448  }
  0x19   :  { %404 = vst.msk [vmem:[#allocation2 + $0x10] sm:$0xff] %vm250_vm2, %v1662_v16  ;;  %406 = vst.msk [vmem:[#allocation2 + $0x20] sm:$0xff] %vm250_vm2, %v1662_v16  ;;  %s1667_s17 = smov 16   ;;  %s1668_s18 = smov 80   ;;  %vm733_vm6 = vcmask 523648   ;;  %vm806_vm7 = vcmask 654848  }
  0x1a   :  { %408 = vst.msk [vmem:[#allocation2 + $0x30] sm:$0xff] %vm250_vm2, %v1662_v16  ;;  %410 = vst.msk [vmem:[#allocation2 + $0x40] sm:$0xff] %vm250_vm2, %v1662_v16  ;;  %s1669_s19 = smov 32   ;;  %vm879_vm8 = vcmask 786048   ;;  %vm953_vm9 = vcmask 917248   ;;  %vm1026_vm10 = vcmask 1048448  }
  0x1b   :  { %1563 = vmatpush3.bf16.msra.mxu0 %v151_v8  ;;  %412 = vst.msk [vmem:[#allocation2 + $0x50] sm:$0xff] %vm250_vm2, %v1662_v16  ;;  %414 = vst.msk [vmem:[#allocation2 + $0x60] sm:$0xff] %vm250_vm2, %v1662_v16  ;;  %vm467_vm11 = vcmask 122880   ;;  %vm476_vm12 = vcmask 124930   ;;  %vm485_vm13 = vcmask 126980   ;;  %vm494_vm14 = vcmask 129030  }
  0x1c   :  { %416 = vst.msk [vmem:[#allocation2 + $0x70] sm:$0xff] %vm250_vm2, %v1662_v16  ;;  %418 = vst.msk [vmem:[#allocation2 + $0x80] sm:$0xff] %vm250_vm2, %v1662_v16  ;;  %vm1266_vm15 = vcmask 125952  }
  0x1d   :  { %420 = vst.msk [vmem:[#allocation2 + $0x90] sm:$0xff] %vm250_vm2, %v1662_v16  ;;  %428 = vst.msk [vmem:[#allocation2 + $0xd0] sm:$0xff] %vm250_vm2, %v1662_v16 }
  0x1e   :  { %1565 = vmatmul.mubr.msk.bf16.vlgmr.msra.gmra.mrb[0].mxu0 %vm124_vm0, %v1618_v9  ;;  %430 = vst.msk [vmem:[#allocation2 + $0xe0] sm:$0xff] %vm250_vm2, %v1662_v16  ;;  %432 = vst.msk [vmem:[#allocation2 + $0xf0] sm:$0xff] %vm250_vm2, %v1662_v16 }
  0x1f   :  { %1568 = vmatprep.mubr.msk.bf16.mxu0 %vm124_vm0, %v1619_v10  ;;  %413 = vst.msk [vmem:[#allocation2 + $0x58] sm:$0x3] %vm402_vm3, %v1662_v16  ;;  %403 = vst.msk [vmem:[#allocation2 + $0x8] sm:$0x3] %vm402_vm3, %v1662_v16 }
  0x20   :  { %405 = vst.msk [vmem:[#allocation2 + $0x18] sm:$0x3] %vm402_vm3, %v1662_v16  ;;  %407 = vst.msk [vmem:[#allocation2 + $0x28] sm:$0x3] %vm402_vm3, %v1662_v16 }
  0x21   :  { %409 = vst.msk [vmem:[#allocation2 + $0x38] sm:$0x3] %vm402_vm3, %v1662_v16  ;;  %411 = vst.msk [vmem:[#allocation2 + $0x48] sm:$0x3] %vm402_vm3, %v1662_v16 }
  0x22   :  { %415 = vst.msk [vmem:[#allocation2 + $0x68] sm:$0x3] %vm402_vm3, %v1662_v16  ;;  %417 = vst.msk [vmem:[#allocation2 + $0x78] sm:$0x3] %vm402_vm3, %v1662_v16  ;;  %v896_v17 = vld [vmem:[#allocation2 + $0x50] sm:$0xff]  ;;  %v897_v20 = vld [vmem:[#allocation2 + $0x60] sm:$0xff] }
  0x23   :  { %419 = vst.msk [vmem:[#allocation2 + $0x88] sm:$0x3] %vm402_vm3, %v1662_v16  ;;  %421 = vst.msk [vmem:[#allocation2 + $0x98] sm:$0x3] %vm402_vm3, %v1662_v16  ;;  %923 = vrot.lane.b32.xlu1 %v896_v17, %s1663_s0  ;;  %705 = vrot.lane.b32.xlu0 %v896_v17, %s1665_s15  ;;  %v898_v25 = vld [vmem:[#allocation2 + $0x70] sm:$0xff] }
  0x24   :  { %423 = vst.msk [vmem:[#allocation2 + $0xa8] sm:$0x3] %vm402_vm3, %v1662_v16  ;;  %425 = vst.msk [vmem:[#allocation2 + $0xb8] sm:$0x3] %vm402_vm3, %v1662_v16  ;;  %v1803_v31 = vld [vmem:[#allocation2 + $0xd0] sm:$0xff] }
  0x25   :  { %427 = vst.msk [vmem:[#allocation2 + $0xc8] sm:$0x3] %vm402_vm3, %v1662_v16  ;;  %429 = vst.msk [vmem:[#allocation2 + $0xd8] sm:$0x3] %vm402_vm3, %v1662_v16 }
  0x26   :  { %1569 = vmatmul.mubr.msk.bf16.gmra.mrb[4].mxu0 %vm124_vm0, %v1620_v11  ;;  %431 = vst.msk [vmem:[#allocation2 + $0xe8] sm:$0x3] %vm402_vm3, %v1662_v16  ;;  %433 = vst.msk [vmem:[#allocation2 + $0xf8] sm:$0x3] %vm402_vm3, %v1662_v16  ;;  %v969_v18 = vld [vmem:[#allocation2 + $0x51] sm:$0xff]  ;;  %v527_v30 = vld [vmem:[#allocation2 + $0x1] sm:$0xff] }
  0x27   :  { %1572 = vmatprep.mubr.msk.bf16.mxu0 %vm124_vm0, %v1621_v12  ;;  %520 = vst.msk [vmem:[#allocation3 + $0x50] sm:$0xff] %vm250_vm2, %v896_v17  ;;  %996 = vrot.lane.b32.xlu1 %v969_v18, %s1664_s14  ;;  %v823_v19 = vld [vmem:[#allocation2 + $0x52] sm:$0xff]  ;;  %526 = vst.msk [vmem:[#allocation3 + $0xb0] sm:$0xff] %vm250_vm2, %v1803_v31  ;;  %v600_v35 = vld [vmem:[#allocation2 + $0x2] sm:$0xff] }
  0x28   :  { %778 = vrot.lane.b32.xlu0 %v969_v18, %s1666_s16  ;;  %1054 = vst.msk [vmem:[#allocation3 + $0x38] sm:$0xff] %vm250_vm2, %v823_v19 }
  0x29   :  { %v970_v21 = vld [vmem:[#allocation2 + $0x61] sm:$0xff]  ;;  %v971_v28 = vld [vmem:[#allocation2 + $0x71] sm:$0xff] }
  0x2a   :  { %v533_v22 = vld [vmem:[#allocation2 + $0x81] sm:$0xff] }
  0x2b   :  { %561 = vrot.lane.b32.xlu1 %v969_v18, %s1667_s17  ;;  %v824_v23 = vld [vmem:[#allocation2 + $0x62] sm:$0xff] }
  0x2c   :  { %851 = vrot.lane.b32.xlu0 %v823_v19, %s1668_s18  ;;  %1055 = vst.msk [vmem:[#allocation3 + $0x48] sm:$0xff] %vm250_vm2, %v824_v23  ;;  %v606_v24 = vld [vmem:[#allocation2 + $0x82] sm:$0xff]  ;;  %v1821_v51 = vld [vmem:[#allocation2 + $0xd2] sm:$0xff] }
  0x2d   :  { %1060 = vst.msk [vmem:[#allocation3 + $0x98] sm:$0xff] %vm250_vm2, %v1821_v51 }
  0x2e   :  { %1573 = vmatmul.mubr.msk.bf16.gmra.mrb[8].mxu0 %vm124_vm0, %v1622_v13 }
  0x2f   :  { %1576 = vmatprep.mubr.msk.bf16.mxu0 %vm124_vm0, %v1623_v14  ;;  %634 = vrot.lane.b32.xlu1 %v823_v19, %s1669_s19 }
  0x30   :  { %925 = vrot.lane.b32.xlu0 %v897_v20, %s1663_s0 }
  0x33   :  { %707 = vrot.lane.b32.xlu1 %v897_v20, %s1665_s15 }
  0x34   :  { %998 = vrot.lane.b32.xlu0 %v970_v21, %s1664_s14 }
  0x36   :  { %1577 = vmatmul.mubr.msk.bf16.gmra.mrb[12].mxu0 %vm124_vm0, %v1624_v15 }
  0x37   :  { %780 = vrot.lane.b32.xlu1 %v970_v21, %s1666_s16 }
  0x38   :  { %563 = vrot.lane.b32.xlu0 %v533_v22, %s1667_s17 }
  0x3b   :  { %853 = vrot.lane.b32.xlu1 %v824_v23, %s1668_s18 }
  0x3c   :  { %636 = vrot.lane.b32.xlu0 %v606_v24, %s1669_s19 }
  0x3f   :  { %927 = vrot.lane.b32.xlu1 %v898_v25, %s1663_s0 }
  0x40   :  { %551 = vrot.lane.b32.xlu0 %v527_v30, %s1667_s17 }
  0x43   :  { %1000 = vrot.lane.b32.xlu1 %v971_v28, %s1664_s14 }
  0x44   :  { %624 = vrot.lane.b32.xlu0 %v600_v35, %s1669_s19 }
  0x47   :  { %935 = vrot.lane.b32.xlu1 %v1803_v31, %s1663_s0 }
  0xf1   :  { %v1796_v26 = vpop.f32.mrb[0].mxu0 }
  0xf2   :  { %v1798_v27 = vpop.f32.mrb[1].mxu0  ;;  %v254_v37 = vsel %vm250_vm2, %v1796_v26, 0.0 }
  0xf3   :  { %v1800_v29 = vpop.f32.mrb[2].mxu0  ;;  %v251_v33 = vsel %vm250_vm2, %v1798_v27, 0.0 }
  0xf4   :  { %v190_v32 = vpop.f32.mrb[3].mxu0  ;;  %v256_v39 = vsel %vm250_vm2, %v1800_v29, 0.0 }
  0xf5   :  { %v252_v34 = vsel %vm250_vm2, %v190_v32, 0.0 }
  0xf6   :  { %v253_v36 = vadd.f32 %v252_v34, %v251_v33 }
  0xf8   :  { %v255_v38 = vadd.f32 %v254_v37, %v253_v36 }
  0xf9   :  { %v1570_v40 = vpop.f32.mrb[4].mxu0 }
  0xfa   :  { %v203_v41 = vpop.f32.mrb[5].mxu0  ;;  %v257_v42 = vadd.f32 %v256_v39, %v255_v38  ;;  %v262_v49 = vsel %vm250_vm2, %v1570_v40, 0.0 }
  0xfb   :  { %v258_v43 = vsel %vm250_vm2, %v203_v41, 0.0  ;;  %v1571_v44 = vpop.f32.mrb[6].mxu0 }
  0xfc   :  { %v259_v45 = vadd.f32 %v258_v43, %v257_v42  ;;  %v206_v46 = vpop.f32.mrb[7].mxu0  ;;  %v264_v52 = vsel %vm250_vm2, %v1571_v44, 0.0 }
  0xfd   :  { %v260_v47 = vsel %vm250_vm2, %v206_v46, 0.0 }
  0xfe   :  { %v261_v48 = vadd.f32 %v260_v47, %v259_v45 }
 0x100   :  { %v263_v50 = vadd.f32 %v262_v49, %v261_v48 }
 0x101   :  { %v1574_v53 = vpop.f32.mrb[8].mxu0 }
 0x102   :  { %v219_v54 = vpop.f32.mrb[9].mxu0  ;;  %v265_v55 = vadd.f32 %v264_v52, %v263_v50  ;;  %v270_v62 = vsel %vm250_vm2, %v1574_v53, 0.0 }
 0x103   :  { %v266_v56 = vsel %vm250_vm2, %v219_v54, 0.0  ;;  %v1575_v57 = vpop.f32.mrb[10].mxu0 }
 0x104   :  { %v267_v58 = vadd.f32 %v266_v56, %v265_v55  ;;  %v222_v59 = vpop.f32.mrb[11].mxu0  ;;  %v272_v0 = vsel %vm250_vm2, %v1575_v57, 0.0 }
 0x105   :  { %v268_v60 = vsel %vm250_vm2, %v222_v59, 0.0 }
 0x106   :  { %v269_v61 = vadd.f32 %v268_v60, %v267_v58 }
 0x108   :  { %v271_v63 = vadd.f32 %v270_v62, %v269_v61 }
 0x109   :  { %v1578_v1 = vpop.f32.mrb[12].mxu0 }
 0x10a   :  { %v235_v2 = vpop.f32.mrb[13].mxu0  ;;  %v273_v3 = vadd.f32 %v272_v0, %v271_v63  ;;  %v278_v10 = vsel %vm250_vm2, %v1578_v1, 0.0 }
 0x10b   :  { %v274_v4 = vsel %vm250_vm2, %v235_v2, 0.0  ;;  %v1579_v5 = vpop.f32.mrb[14].mxu0 }
 0x10c   :  { %v275_v6 = vadd.f32 %v274_v4, %v273_v3  ;;  %v238_v7 = vpop.f32.mrb[15].mxu0  ;;  %v280_v12 = vsel %vm250_vm2, %v1579_v5, 0.0 }
 0x10d   :  { %v276_v8 = vsel %vm250_vm2, %v238_v7, 0.0 }
 0x10e   :  { %v277_v9 = vadd.f32 %v276_v8, %v275_v6 }
 0x110   :  { %v279_v11 = vadd.f32 %v278_v10, %v277_v9 }
 0x112   :  { %v281_v13 = vadd.f32 %v280_v12, %v279_v11 }
 0x114   :  { %v282_v14 = vrot.slane %v281_v13, 4 }
 0x116   :  { %v283_v15 = vadd.f32 %v282_v14, %v281_v13 }
 0x118   :  { %v284_v16 = vrot.slane %v283_v15, 2 }
 0x11a   :  { %v285_v17 = vadd.f32 %v284_v16, %v283_v15 }
 0x11c   :  { %v286_v18 = vrot.slane %v285_v17, 1 }
 0x11e   :  { %v287_v19 = vadd.f32 %v286_v18, %v285_v17 }
 0x120   :  { %v288_v20 = vmul.f32 0.0078125, %v287_v19 }
 0x122   :  { %v1835_v21 = vsub.f32 %v1798_v27, %v288_v20  ;;  %v1837_v22 = vsub.f32 %v190_v32, %v288_v20  ;;  %v1840_v23 = vsub.f32 %v1796_v26, %v288_v20  ;;  %v1843_v24 = vsub.f32 %v1800_v29, %v288_v20 }
 0x123   :  { %v1845_v25 = vsub.f32 %v203_v41, %v288_v20  ;;  %v1847_v28 = vsub.f32 %v206_v46, %v288_v20  ;;  %v1849_v30 = vsub.f32 %v1570_v40, %v288_v20  ;;  %v1851_v33 = vsub.f32 %v1571_v44, %v288_v20 }
 0x124   :  { %v1853_v34 = vsub.f32 %v219_v54, %v288_v20  ;;  %v1855_v27 = vsub.f32 %v222_v59, %v288_v20  ;;  %v1857_v32 = vsub.f32 %v1574_v53, %v288_v20  ;;  %v1859_v35 = vsub.f32 %v1575_v57, %v288_v20 }
 0x125   :  { %v1861_v26 = vsub.f32 %v235_v2, %v288_v20  ;;  %v1863_v29 = vsub.f32 %v238_v7, %v288_v20  ;;  %v1865_v36 = vsub.f32 %v1578_v1, %v288_v20  ;;  %v1867_v37 = vsub.f32 %v1579_v5, %v288_v20  ;;  %v1916_v20 = vpop.permute.xlu1 %923 }
 0x126   :  { %v305_v38 = vmul.f32 %v1835_v21, %v1835_v21  ;;  %v306_v39 = vmul.f32 %v1837_v22, %v1837_v22  ;;  %v307_v40 = vmul.f32 %v1840_v23, %v1840_v23  ;;  %v308_v41 = vmul.f32 %v1843_v24, %v1843_v24 }
 0x127   :  { %v309_v45 = vmul.f32 %v1845_v25, %v1845_v25  ;;  %v310_v48 = vmul.f32 %v1847_v28, %v1847_v28  ;;  %v311_v52 = vmul.f32 %v1849_v30, %v1849_v30  ;;  %v312_v55 = vmul.f32 %v1851_v33, %v1851_v33 }
 0x128   :  { %v321_v42 = vsel %vm250_vm2, %v305_v38, 0.0  ;;  %v322_v43 = vsel %vm250_vm2, %v306_v39, 0.0  ;;  %v324_v46 = vsel %vm250_vm2, %v307_v40, 0.0  ;;  %v326_v49 = vsel %vm250_vm2, %v308_v41, 0.0 }
 0x129   :  { %v323_v44 = vadd.f32 %v322_v43, %v321_v42  ;;  %v328_v53 = vsel %vm250_vm2, %v309_v45, 0.0  ;;  %v330_v56 = vsel %vm250_vm2, %v310_v48, 0.0  ;;  %v313_v58 = vmul.f32 %v1853_v34, %v1853_v34  ;;  %v1919_v41 = vpop.permute.xlu1 %996  ;;  %v1921_v42 = vpop.permute.xlu0 %705 }
 0x12a   :  { %v332_v59 = vsel %vm250_vm2, %v311_v52, 0.0  ;;  %v314_v61 = vmul.f32 %v1855_v27, %v1855_v27  ;;  %v334_v62 = vsel %vm250_vm2, %v312_v55, 0.0  ;;  %v315_v0 = vmul.f32 %v1857_v32, %v1857_v32 }
 0x12b   :  { %v325_v47 = vadd.f32 %v324_v46, %v323_v44  ;;  %v336_v1 = vsel %vm250_vm2, %v313_v58, 0.0  ;;  %v316_v3 = vmul.f32 %v1859_v35, %v1859_v35  ;;  %v317_v6 = vmul.f32 %v1861_v26, %v1861_v26 }
 0x12c   :  { %v338_v4 = vsel %vm250_vm2, %v314_v61, 0.0  ;;  %v340_v7 = vsel %vm250_vm2, %v315_v0, 0.0  ;;  %v318_v9 = vmul.f32 %v1863_v29, %v1863_v29  ;;  %v319_v12 = vmul.f32 %v1865_v36, %v1865_v36 }
 0x12d   :  { %v327_v50 = vadd.f32 %v326_v49, %v325_v47  ;;  %v342_v10 = vsel %vm250_vm2, %v316_v3, 0.0  ;;  %v344_v13 = vsel %vm250_vm2, %v317_v6, 0.0  ;;  %v320_v15 = vmul.f32 %v1867_v37, %v1867_v37  ;;  %v1923_v45 = vpop.permute.xlu0 %778  ;;  %v562_v46 = vpop.permute.xlu1 %561 }
 0x12e   :  { %v346_v16 = vsel %vm250_vm2, %v318_v9, 0.0  ;;  %v348_v18 = vsel %vm250_vm2, %v319_v12, 0.0  ;;  %593 = vst.msk [vmem:[#allocation3 + $0x50] sm:$0xff] %vm587_vm4, %v562_v46 }
 0x12f   :  { %v329_v54 = vadd.f32 %v328_v53, %v327_v50  ;;  %v350_v38 = vsel %vm250_vm2, %v320_v15, 0.0 }
 0x131   :  { %v331_v57 = vadd.f32 %v330_v56, %v329_v54  ;;  %v1926_v49 = vpop.permute.xlu0 %851  ;;  %v635_v50 = vpop.permute.xlu1 %634 }
 0x132   :  { %666 = vst.msk [vmem:[#allocation3 + $0x50] sm:$0xff] %vm660_vm5, %v635_v50 }
 0x133   :  { %v333_v60 = vadd.f32 %v332_v59, %v331_v57  ;;  %v509_v59 = vld [vmem:[#allocation2 + $0x80] sm:$0xff] }
 0x134   :  { %521 = vst.msk [vmem:[#allocation3 + $0x60] sm:$0xff] %vm250_vm2, %v509_v59 }
 0x135   :  { %v335_v63 = vadd.f32 %v334_v62, %v333_v60  ;;  %v1929_v54 = vpop.permute.xlu0 %925  ;;  %v708_v55 = vpop.permute.xlu1 %707 }
 0x136   :  { %739 = vst.msk [vmem:[#allocation3 + $0x50] sm:$0xff] %vm733_vm6, %v708_v55 }
 0x137   :  { %v337_v2 = vadd.f32 %v336_v1, %v335_v63  ;;  %v503_v1 = vld [vmem:[#allocation2] sm:$0xff] }
 0x138   :  { %515 = vst.msk [vmem:[#allocation3] sm:$0xff] %vm250_vm2, %v503_v1 }
 0x139   :  { %v339_v5 = vadd.f32 %v338_v4, %v337_v2  ;;  %v1932_v57 = vpop.permute.xlu0 %998  ;;  %v781_v58 = vpop.permute.xlu1 %780 }
 0x13a   :  { %812 = vst.msk [vmem:[#allocation3 + $0x50] sm:$0xff] %vm806_vm7, %v781_v58 }
 0x13b   :  { %v341_v8 = vadd.f32 %v340_v7, %v339_v5 }
 0x13d   :  { %v343_v11 = vadd.f32 %v342_v10, %v341_v8  ;;  %v564_v60 = vpop.permute.xlu0 %563  ;;  %v854_v61 = vpop.permute.xlu1 %853 }
 0x13e   :  { %594 = vst.msk [vmem:[#allocation3 + $0x60] sm:$0xff] %vm587_vm4, %v564_v60 }
 0x13f   :  { %v345_v14 = vadd.f32 %v344_v13, %v343_v11  ;;  %885 = vst.msk [vmem:[#allocation3 + $0x50] sm:$0xff] %vm879_vm8, %v854_v61 }
 0x141   :  { %v347_v17 = vadd.f32 %v346_v16, %v345_v14  ;;  %v637_v62 = vpop.permute.xlu0 %636  ;;  %v928_v63 = vpop.permute.xlu1 %927 }
 0x142   :  { %667 = vst.msk [vmem:[#allocation3 + $0x60] sm:$0xff] %vm660_vm5, %v637_v62 }
 0x143   :  { %v349_v19 = vadd.f32 %v348_v18, %v347_v17  ;;  %959 = vst.msk [vmem:[#allocation3 + $0x50] sm:$0xff] %vm953_vm9, %v928_v63 }
 0x145   :  { %v351_v39 = vadd.f32 %v350_v38, %v349_v19  ;;  %v1001_v10 = vpop.permute.xlu1 %1000 }
 0x146   :  { %1032 = vst.msk [vmem:[#allocation3 + $0x50] sm:$0xff] %vm1026_vm10, %v1001_v10 }
 0x147   :  { %v352_v40 = vrot.slane %v351_v39, 4 }
 0x149   :  { %v353_v43 = vadd.f32 %v352_v40, %v351_v39 }
 0x14b   :  { %v354_v44 = vrot.slane %v353_v43, 2 }
 0x14d   :  { %v355_v47 = vadd.f32 %v354_v44, %v353_v43 }
 0x14f   :  { %v356_v48 = vrot.slane %v355_v47, 1 }
 0x151   :  { %v357_v52 = vadd.f32 %v356_v48, %v355_v47 }
 0x153   :  { %v358_v53 = vmul.f32 0.0078125, %v357_v52 }
 0x155   :  { %v359_v56 = vadd.f32 1e-05, %v358_v53 }
 0x157   :  { %1634 = vrsqrt.f32 %v359_v56 }
 0x161   :  { %v1635_v0 = vpop.eup %1634 }
 0x162   :  { %v361_v2 = vmul.f32 %v1635_v0, %v1835_v21  ;;  %v362_v3 = vmul.f32 %v1635_v0, %v1837_v22  ;;  %v363_v4 = vmul.f32 %v1635_v0, %v1840_v23  ;;  %v364_v5 = vmul.f32 %v1635_v0, %v1843_v24  ;;  %v552_v24 = vpop.permute.xlu0 %551 }
 0x163   :  { %v365_v6 = vmul.f32 %v1635_v0, %v1845_v25  ;;  %v366_v7 = vmul.f32 %v1635_v0, %v1847_v28  ;;  %v367_v8 = vmul.f32 %v1635_v0, %v1849_v30  ;;  %v368_v9 = vmul.f32 %v1635_v0, %v1851_v33  ;;  %588 = vst.msk [vmem:[#allocation3] sm:$0xff] %vm587_vm4, %v552_v24 }
 0x164   :  { %v369_v11 = vmul.f32 %v1635_v0, %v1853_v34  ;;  %v370_v21 = vmul.f32 %v1635_v0, %v1855_v27  ;;  %v371_v22 = vmul.f32 %v1635_v0, %v1857_v32  ;;  %v372_v23 = vmul.f32 %v1635_v0, %v1859_v35 }
 0x165   :  { %v373_v25 = vmul.f32 %v1635_v0, %v1861_v26  ;;  %v374_v28 = vmul.f32 %v1635_v0, %v1863_v29  ;;  %v375_v30 = vmul.f32 %v1635_v0, %v1865_v36  ;;  %v376_v33 = vmul.f32 %v1635_v0, %v1867_v37 }
 0x166   :  { %v377_v34 = vmax.f32 %v361_v2, 0.0  ;;  %v378_v27 = vmax.f32 %v362_v3, 0.0  ;;  %v379_v32 = vmax.f32 %v363_v4, 0.0  ;;  %v380_v35 = vmax.f32 %v364_v5, 0.0  ;;  %v625_v17 = vpop.permute.xlu0 %624  ;;  %v1625_v2 = vld [vmem:[%s2405_s2] sm:$0xff]  }
 0x167   :  { %v381_v12 = vmax.f32 %v365_v6, 0.0  ;;  %v382_v13 = vmax.f32 %v366_v7, 0.0  ;;  %v383_v14 = vmax.f32 %v367_v8, 0.0  ;;  %v384_v26 = vmax.f32 %v368_v9, 0.0  ;;  %661 = vst.msk [vmem:[#allocation3] sm:$0xff] %vm660_vm5, %v625_v17  ;;  %v1626_v8 = vld [vmem:[%s2405_s2 + $0x8] sm:$0xff]  }
 0x168   :  { %v385_v15 = vmax.f32 %v369_v11, 0.0  ;;  %v386_v29 = vmax.f32 %v370_v21, 0.0  ;;  %v387_v16 = vmax.f32 %v371_v22, 0.0  ;;  %v388_v36 = vmax.f32 %v372_v23, 0.0  ;;  %v1627_v9 = vld [vmem:[%s2405_s2 + $0x10] sm:$0xff]  }
 0x169   :  { %v389_v37 = vmax.f32 %v373_v25, 0.0  ;;  %v390_v18 = vmax.f32 %v374_v28, 0.0  ;;  %v391_v19 = vmax.f32 %v375_v30, 0.0  ;;  %v392_v38 = vmax.f32 %v376_v33, 0.0  ;;  %v1628_v28 = vld [vmem:[%s2405_s2 + $0x18] sm:$0xff]  }
 0x16a   :  { %v393_v39 = vmax.f32 %v377_v34, %v378_v27  ;;  %v394_v40 = vmax.f32 %v379_v32, %v380_v35  ;;  %v395_v43 = vmax.f32 %v381_v12, %v382_v13  ;;  %v396_v44 = vmax.f32 %v383_v14, %v384_v26  ;;  %v1070_v13 = vld [vmem:[#allocation3 + $0x38] sm:$0xff] }
 0x16b   :  { %v397_v46 = vmax.f32 %v385_v15, %v386_v29  ;;  %v398_v47 = vmax.f32 %v387_v16, %v388_v36  ;;  %v399_v48 = vmax.f32 %v389_v37, %v390_v18  ;;  %v400_v50 = vmax.f32 %v391_v19, %v392_v38  ;;  %v1629_v16 = vld [vmem:[%s2405_s2 + $0x20] sm:$0xff]   ;;  %v1630_v18 = vld [vmem:[%s2405_s2 + $0x28] sm:$0xff]   ;;  %v1631_v38 = vld [vmem:[%s2405_s2 + $0x30] sm:$0xff]  }
 0x16c   :  { %v442_v52 = vrot.slane %v393_v39, 1  ;;  %v443_v53 = vrot.slane %v394_v40, 1  ;;  %v444_v55 = vrot.slane %v395_v43, 1  ;;  %v445_v56 = vrot.slane %v396_v44, 1 }
 0x16d   :  { %v446_v58 = vrot.slane %v397_v46, 1  ;;  %v447_v59 = vrot.slane %v398_v47, 1  ;;  %v448_v60 = vrot.slane %v399_v48, 1  ;;  %v449_v61 = vrot.slane %v400_v50, 1 }
 0x16e   :  { %v459_v62 = vmax.f32 %v394_v40, %v443_v53  ;;  %v460_v63 = vmax.f32 %v395_v43, %v444_v55  ;;  %v461_v0 = vmax.f32 %v396_v44, %v445_v56  ;;  %v458_v1 = vmax.f32 %v393_v39, %v442_v52  ;;  %v1632_v39 = vld [vmem:[%s2405_s2 + $0x38] sm:$0xff]   ;;  %v1633_v43 = vld [vmem:[%s2405_s2 + $0x40] sm:$0xff]   ;;  %s1671_s2 = smov [#allocation4]  }
 0x16f   :  { %v462_v3 = vmax.f32 %v397_v46, %v446_v58  ;;  %v463_v4 = vmax.f32 %v398_v47, %v447_v59  ;;  %v464_v5 = vmax.f32 %v399_v48, %v448_v60  ;;  %v465_v6 = vmax.f32 %v400_v50, %v449_v61  ;;  %v1044_v46 = vld [vmem:[#allocation2 + $0x72] sm:$0xff]  ;;  %v830_v50 = vld [vmem:[#allocation2 + $0xe2] sm:$0xff]  ;;  %v2188_v59 = vpop.permute.xlu1 %935  ;;  %s1486_s10 = sshll.u32 %s1671_s2, 4  ;;  %s1487_s10 = int_to_ptr.vmem [resolvable:$true] %s1486_s10 }
 0x170   :  { %469 = vst.msk [vmem:[#allocation2 + $0x21] sm:$0x1] %vm467_vm11, %v459_v62  ;;  %470 = vst.msk [vmem:[#allocation2 + $0x31] sm:$0x1] %vm467_vm11, %v460_v63  ;;  %v1670_v7 = vmov 0   ;;  %v975_v56 = vld [vmem:[#allocation2 + $0xd1] sm:$0xff]  ;;  %p1643_p1 = scmp.lt.s32.totalorder %s1487_s10, %s1487_s10 }
 0x171   :  { %471 = vst.msk [vmem:[#allocation2 + $0x41] sm:$0x1] %vm467_vm11, %v461_v0  ;;  %468 = vst.msk [vmem:[#allocation2 + $0x11] sm:$0x1] %vm467_vm11, %v458_v1  ;;  %1580 = vmatprep.subr.bf16.mxu1 %v1670_v7  ;;  %1189 = vmatprep.subr.bf16.mxu0 %v1670_v7  ;;  %v684_v58 = vld [vmem:[#allocation2 + $0xe0] sm:$0xff]  ;;  %s1638_s11 = scalar_lea.vmem %s1487_s10, 128 }
 0x172   :  { %478 = vst.msk [vmem:[#allocation2 + $0x20] sm:$0x4] %vm476_vm12, %v459_v62  ;;  %479 = vst.msk [vmem:[#allocation2 + $0x30] sm:$0x4] %vm476_vm12, %v460_v63  ;;  %1589 = vmatpush1.bf16.msra.mxu1 %v1625_v2  ;;  %1190 = vmatpush1.bf16.msra.mxu0 %v1625_v2  ;;  %v757_v60 = vld [vmem:[#allocation2 + $0xe1] sm:$0xff]  ;;  %p1639_p0 = scmp.ne.s32.totalorder %s1487_s10, %s1638_s11  ;;  %p1644_p2 = scmp.lt.s32.totalorder %s1638_s11, %s1638_s11 }
 0x173   :  { %480 = vst.msk [vmem:[#allocation2 + $0x40] sm:$0x4] %vm476_vm12, %v461_v0  ;;  %477 = vst.msk [vmem:[#allocation2 + $0x10] sm:$0x4] %vm476_vm12, %v458_v1  ;;  %1581 = vmatprep.subr.bf16.mxu1 %v1670_v7  ;;  %1191 = vmatprep.subr.bf16.mxu0 %v1670_v7 }
 0x174   :  { %487 = vst.msk [vmem:[#allocation2 + $0x1f] sm:$0x10] %vm485_vm13, %v459_v62  ;;  %488 = vst.msk [vmem:[#allocation2 + $0x2f] sm:$0x10] %vm485_vm13, %v460_v63  ;;  %p1645_p3 = por %p1644_p2, %p1643_p1 }
 0x175   :  { %489 = vst.msk [vmem:[#allocation2 + $0x3f] sm:$0x10] %vm485_vm13, %v461_v0  ;;  %486 = vst.msk [vmem:[#allocation2 + $0xf] sm:$0x10] %vm485_vm13, %v458_v1 }
 0x176   :  { %496 = vst.msk [vmem:[#allocation2 + $0x1e] sm:$0x40] %vm494_vm14, %v459_v62  ;;  %497 = vst.msk [vmem:[#allocation2 + $0x2e] sm:$0x40] %vm494_vm14, %v460_v63  ;;  %1590 = vmatpush1.bf16.msra.mxu1 %v1626_v8  ;;  %1192 = vmatpush1.bf16.msra.mxu0 %v1626_v8  ;;  %v904_v63 = vld [vmem:[#allocation2 + $0xf0] sm:$0xff]  ;;  %p1646_p4 = pnand %p1645_p3, %p1639_p0 }
 0x177   :  { %498 = vst.msk [vmem:[#allocation2 + $0x3e] sm:$0x40] %vm494_vm14, %v461_v0  ;;  %495 = vst.msk [vmem:[#allocation2 + $0xe] sm:$0x40] %vm494_vm14, %v458_v1  ;;  %1582 = vmatprep.subr.bf16.mxu1 %v1670_v7  ;;  %1193 = vmatprep.subr.bf16.mxu0 %v1670_v7 }
 0x178   :  { %473 = vst.msk [vmem:[#allocation2 + $0xa1] sm:$0x1] %vm467_vm11, %v463_v4  ;;  %474 = vst.msk [vmem:[#allocation2 + $0xb1] sm:$0x1] %vm467_vm11, %v464_v5 }
 0x179   :  { %475 = vst.msk [vmem:[#allocation2 + $0xc1] sm:$0x1] %vm467_vm11, %v465_v6  ;;  %472 = vst.msk [vmem:[#allocation2 + $0x91] sm:$0x1] %vm467_vm11, %v462_v3 }
 0x17a   :  { %482 = vst.msk [vmem:[#allocation2 + $0xa0] sm:$0x4] %vm476_vm12, %v463_v4  ;;  %483 = vst.msk [vmem:[#allocation2 + $0xb0] sm:$0x4] %vm476_vm12, %v464_v5  ;;  %1591 = vmatpush1.bf16.msra.mxu1 %v1627_v9  ;;  %1194 = vmatpush1.bf16.msra.mxu0 %v1627_v9 }
 0x17b   :  { %484 = vst.msk [vmem:[#allocation2 + $0xc0] sm:$0x4] %vm476_vm12, %v465_v6  ;;  %481 = vst.msk [vmem:[#allocation2 + $0x90] sm:$0x4] %vm476_vm12, %v462_v3  ;;  %1583 = vmatprep.subr.bf16.mxu1 %v1670_v7  ;;  %1195 = vmatprep.subr.bf16.mxu0 %v1670_v7 }
 0x17c   :  { %491 = vst.msk [vmem:[#allocation2 + $0x9f] sm:$0x10] %vm485_vm13, %v463_v4  ;;  %492 = vst.msk [vmem:[#allocation2 + $0xaf] sm:$0x10] %vm485_vm13, %v464_v5 }
 0x17d   :  { %493 = vst.msk [vmem:[#allocation2 + $0xbf] sm:$0x10] %vm485_vm13, %v465_v6  ;;  %490 = vst.msk [vmem:[#allocation2 + $0x8f] sm:$0x10] %vm485_vm13, %v462_v3  ;;  %v2005_v10 = vld [vmem:[#allocation2 + $0x22] sm:$0xff]  ;;  %v2009_v21 = vld [vmem:[#allocation2 + $0x32] sm:$0xff] }
 0x17e   :  { %500 = vst.msk [vmem:[#allocation2 + $0x9e] sm:$0x40] %vm494_vm14, %v463_v4  ;;  %501 = vst.msk [vmem:[#allocation2 + $0xae] sm:$0x40] %vm494_vm14, %v464_v5  ;;  %v2007_v11 = vld [vmem:[#allocation2 + $0x21] sm:$0xff]  ;;  %628 = vrot.lane.b32.xlu1 %v2005_v10, %s1669_s19  ;;  %v2019_v23 = vld [vmem:[#allocation2 + $0x30] sm:$0xff]  ;;  %1592 = vmatpush1.bf16.msra.mxu1 %v1628_v28 }
 0x17f   :  { %502 = vst.msk [vmem:[#allocation2 + $0xbe] sm:$0x40] %vm494_vm14, %v465_v6  ;;  %499 = vst.msk [vmem:[#allocation2 + $0x8e] sm:$0x40] %vm494_vm14, %v462_v3  ;;  %555 = vrot.lane.b32.xlu0 %v2007_v11, %s1667_s17  ;;  %v2017_v22 = vld [vmem:[#allocation2 + $0x40] sm:$0xff]  ;;  %v2038_v30 = vld [vmem:[#allocation2 + $0x31] sm:$0xff]  ;;  %1196 = vmatpush1.bf16.msra.mxu0 %v1628_v28 }
 0x180   :  { %1051 = vst.msk [vmem:[#allocation3 + $0x8] sm:$0xff] %vm250_vm2, %v2005_v10  ;;  %1052 = vst.msk [vmem:[#allocation3 + $0x18] sm:$0xff] %vm250_vm2, %v2009_v21  ;;  %v2025_v24 = vld [vmem:[#allocation2 + $0x42] sm:$0xff]  ;;  %v2054_v32 = vld [vmem:[#allocation2 + $0x10] sm:$0xff]  ;;  %1584 = vmatprep.subr.bf16.mxu1 %v1670_v7  ;;  %1197 = vmatprep.subr.bf16.mxu0 %v1670_v7 }
 0x181   :  { %518 = vst.msk [vmem:[#allocation3 + $0x30] sm:$0xff] %vm250_vm2, %v2019_v23  ;;  %519 = vst.msk [vmem:[#allocation3 + $0x40] sm:$0xff] %vm250_vm2, %v2017_v22  ;;  %v2060_v35 = vld [vmem:[#allocation2 + $0x20] sm:$0xff]  ;;  %v528_v48 = vld [vmem:[#allocation2 + $0x11] sm:$0xff] }
 0x182   :  { %1053 = vst.msk [vmem:[#allocation3 + $0x28] sm:$0xff] %vm250_vm2, %v2025_v24  ;;  %630 = vrot.lane.b32.xlu1 %v2009_v21, %s1669_s19  ;;  %516 = vst.msk [vmem:[#allocation3 + $0x10] sm:$0xff] %vm250_vm2, %v2054_v32  ;;  %1593 = vmatpush1.bf16.msra.mxu1 %v1629_v16  ;;  %v749_v19 = vld [vmem:[#allocation2 + $0x41] sm:$0xff]  ;;  %v601_v52 = vld [vmem:[#allocation2 + $0x12] sm:$0xff] }
 0x183   :  { %557 = vrot.lane.b32.xlu0 %v2038_v30, %s1667_s17  ;;  %517 = vst.msk [vmem:[#allocation3 + $0x20] sm:$0xff] %vm250_vm2, %v2060_v35  ;;  %1585 = vmatprep.subr.bf16.mxu1 %v1670_v7  ;;  %1056 = vst.msk [vmem:[#allocation3 + $0x58] sm:$0xff] %vm250_vm2, %v1044_v46 }
 0x184   :  { %1198 = vmatpush1.bf16.msra.mxu0 %v1629_v16  ;;  %1061 = vst.msk [vmem:[#allocation3 + $0xa8] sm:$0xff] %vm250_vm2, %v830_v50 }
 0x185   :  { %v2033_v25 = vld [vmem:[#allocation2 + $0xa0] sm:$0xff]  ;;  %v2052_v27 = vld [vmem:[#allocation2 + $0xb0] sm:$0xff]  ;;  %1199 = vmatprep.subr.bf16.mxu0 %v1670_v7 }
 0x186   :  { %v2040_v33 = vld [vmem:[#allocation2 + $0x90] sm:$0xff]  ;;  %v2042_v34 = vld [vmem:[#allocation2 + $0xa2] sm:$0xff]  ;;  %523 = vst.msk [vmem:[#allocation3 + $0x80] sm:$0xff] %vm250_vm2, %v2033_v25  ;;  %524 = vst.msk [vmem:[#allocation3 + $0x90] sm:$0xff] %vm250_vm2, %v2052_v27  ;;  %703 = vrot.lane.b32.xlu1 %v2017_v22, %s1665_s15  ;;  %1594 = vmatpush1.bf16.msra.mxu1 %v1630_v18 }
 0x187   :  { %522 = vst.msk [vmem:[#allocation3 + $0x70] sm:$0xff] %vm250_vm2, %v2040_v33  ;;  %1057 = vst.msk [vmem:[#allocation3 + $0x68] sm:$0xff] %vm250_vm2, %v2042_v34  ;;  %v2062_v12 = vld [vmem:[#allocation2 + $0xb2] sm:$0xff]  ;;  %v2068_v14 = vld [vmem:[#allocation2 + $0xc0] sm:$0xff]  ;;  %701 = vrot.lane.b32.xlu0 %v2019_v23, %s1665_s15  ;;  %1586 = vmatprep.subr.bf16.mxu1 %v1670_v7 }
 0x188   :  { %v2070_v26 = vld [vmem:[#allocation2 + $0xc2] sm:$0xff]  ;;  %1058 = vst.msk [vmem:[#allocation3 + $0x78] sm:$0xff] %vm250_vm2, %v2062_v12  ;;  %v1066_v29 = vld [vmem:[#allocation3 + $0x18] sm:$0xff]  ;;  %525 = vst.msk [vmem:[#allocation3 + $0xa0] sm:$0xff] %vm250_vm2, %v2068_v14  ;;  %1200 = vmatpush1.bf16.msra.mxu0 %v1630_v18 }
 0x189   :  { %v1064_v15 = vld [vmem:[#allocation3 + $0x8] sm:$0xff]  ;;  %1059 = vst.msk [vmem:[#allocation3 + $0x88] sm:$0xff] %vm250_vm2, %v2070_v26  ;;  %1201 = vmatprep.subr.bf16.mxu0 %v1670_v7  ;;  %v534_v40 = vld [vmem:[#allocation2 + $0x91] sm:$0xff] }
 0x18a   :  { %v1088_v36 = vpack.c.bf16 %v1066_v29, %v1064_v15  ;;  %v1068_v17 = vld [vmem:[#allocation3 + $0x28] sm:$0xff]  ;;  %776 = vrot.lane.b32.xlu1 %v749_v19, %s1666_s16  ;;  %1595 = vmatpush1.bf16.msra.mxu1 %v1631_v38  ;;  %v607_v44 = vld [vmem:[#allocation2 + $0x92] sm:$0xff] }
 0x18b   :  { %v1090_v37 = vpack.c.bf16 %v1070_v13, %v1068_v17  ;;  %774 = vrot.lane.b32.xlu0 %v2038_v30, %s1666_s16  ;;  %1587 = vmatprep.subr.bf16.mxu1 %v1670_v7  ;;  %v753_v47 = vld [vmem:[#allocation2 + $0xa1] sm:$0xff]  ;;  %v973_v53 = vld [vmem:[#allocation2 + $0xb1] sm:$0xff] }
 0x18c   :  { %1529 = vmatprep.mubr.msk.bf16.mxu0 %vm250_vm2, %v1088_v36  ;;  %1202 = vmatpush1.bf16.msra.mxu0 %v1631_v38  ;;  %v755_v55 = vld [vmem:[#allocation2 + $0xc1] sm:$0xff]  ;;  %v1073_v13 = vld [vmem:[#allocation3 + $0x50] sm:$0xff] }
 0x18d   :  { %1530 = vmatprep.mubr.msk.bf16.mxu1 %vm250_vm2, %v1090_v37  ;;  %1203 = vmatprep.subr.bf16.mxu0 %v1670_v7 }
 0x18e   :  { %849 = vrot.lane.b32.xlu1 %v2025_v24, %s1668_s18  ;;  %1596 = vmatpush1.bf16.msra.mxu1 %v1632_v39 }
 0x18f   :  { %847 = vrot.lane.b32.xlu0 %v2009_v21, %s1668_s18  ;;  %1588 = vmatprep.subr.bf16.mxu1 %v1670_v7 }
 0x190   :  { %1204 = vmatpush1.bf16.msra.mxu0 %v1632_v39  ;;  %v1080_v39 = vld [vmem:[#allocation3 + $0x88] sm:$0xff] }
 0x191   :  { %1205 = vmatprep.subr.bf16.mxu0 %v1670_v7 }
 0x192   :  { %565 = vrot.lane.b32.xlu1 %v534_v40, %s1667_s17  ;;  %1597 = vmatpush1.bf16.msra.mxu1 %v1633_v43 }
 0x193   :  { %921 = vrot.lane.b32.xlu0 %v2017_v22, %s1663_s0  ;;  %v1072_v22 = vld [vmem:[#allocation3 + $0x48] sm:$0xff] }
 0x194   :  { %1206 = vmatpush1.bf16.msra.mxu0 %v1633_v43 }
 0x196   :  { %638 = vrot.lane.b32.xlu1 %v607_v44, %s1669_s19 }
 0x197   :  { %994 = vrot.lane.b32.xlu0 %v749_v19, %s1664_s14 }
 0x19a   :  { %711 = vrot.lane.b32.xlu1 %v2033_v25, %s1665_s15 }
 0x19b   :  { %559 = vrot.lane.b32.xlu0 %v749_v19, %s1667_s17 }
 0x19e   :  { %784 = vrot.lane.b32.xlu1 %v753_v47, %s1666_s16 }
 0x19f   :  { %632 = vrot.lane.b32.xlu0 %v2025_v24, %s1669_s19 }
 0x1a2   :  { %553 = vrot.lane.b32.xlu1 %v528_v48, %s1667_s17 }
 0x1a3   :  { %709 = vrot.lane.b32.xlu0 %v2040_v33, %s1665_s15 }
 0x1a6   :  { %857 = vrot.lane.b32.xlu1 %v2042_v34, %s1668_s18 }
 0x1a7   :  { %782 = vrot.lane.b32.xlu0 %v534_v40, %s1666_s16  ;;  %v1082_v40 = vld [vmem:[#allocation3 + $0x98] sm:$0xff] }
 0x1aa   :  { %626 = vrot.lane.b32.xlu1 %v601_v52, %s1669_s19 }
 0x1ab   :  { %855 = vrot.lane.b32.xlu0 %v607_v44, %s1668_s18 }
 0x1ae   :  { %931 = vrot.lane.b32.xlu1 %v2052_v27, %s1663_s0 }
 0x1af   :  { %929 = vrot.lane.b32.xlu0 %v2033_v25, %s1663_s0 }
 0x1b2   :  { %699 = vrot.lane.b32.xlu1 %v2060_v35, %s1665_s15 }
 0x1b3   :  { %697 = vrot.lane.b32.xlu0 %v2054_v32, %s1665_s15 }
 0x1b6   :  { %1004 = vrot.lane.b32.xlu1 %v973_v53, %s1664_s14 }
 0x1b7   :  { %1002 = vrot.lane.b32.xlu0 %v753_v47, %s1664_s14 }
 0x1ba   :  { %772 = vrot.lane.b32.xlu1 %v2007_v11, %s1666_s16 }
 0x1bb   :  { %770 = vrot.lane.b32.xlu0 %v528_v48, %s1666_s16 }
 0x1be   :  { %569 = vrot.lane.b32.xlu1 %v973_v53, %s1667_s17 }
 0x1bf   :  { %567 = vrot.lane.b32.xlu0 %v753_v47, %s1667_s17  ;;  %v1096_v47 = vpack.c.bf16 %v1082_v40, %v1080_v39 }
 0x1c2   :  { %845 = vrot.lane.b32.xlu1 %v2005_v10, %s1668_s18 }
 0x1c3   :  { %843 = vrot.lane.b32.xlu0 %v601_v52, %s1668_s18 }
 0x1c6   :  { %642 = vrot.lane.b32.xlu1 %v2062_v12, %s1669_s19 }
 0x1c7   :  { %640 = vrot.lane.b32.xlu0 %v2042_v34, %s1669_s19 }
 0x1ca   :  { %919 = vrot.lane.b32.xlu1 %v2019_v23, %s1663_s0 }
 0x1cb   :  { %917 = vrot.lane.b32.xlu0 %v2060_v35, %s1663_s0  ;;  %v1076_v35 = vld [vmem:[#allocation3 + $0x68] sm:$0xff] }
 0x1ce   :  { %715 = vrot.lane.b32.xlu1 %v2068_v14, %s1665_s15 }
 0x1cf   :  { %713 = vrot.lane.b32.xlu0 %v2052_v27, %s1665_s15 }
 0x1d2   :  { %992 = vrot.lane.b32.xlu1 %v2038_v30, %s1664_s14 }
 0x1d3   :  { %990 = vrot.lane.b32.xlu0 %v2007_v11, %s1664_s14 }
 0x1d6   :  { %788 = vrot.lane.b32.xlu1 %v755_v55, %s1666_s16 }
 0x1d7   :  { %786 = vrot.lane.b32.xlu0 %v973_v53, %s1666_s16 }
 0x1da   :  { %861 = vrot.lane.b32.xlu1 %v2070_v26, %s1668_s18 }
 0x1db   :  { %859 = vrot.lane.b32.xlu0 %v2062_v12, %s1668_s18  ;;  %v1078_v12 = vld [vmem:[#allocation3 + $0x78] sm:$0xff] }
 0x1dc   :  { %v1094_v15 = vpack.c.bf16 %v1078_v12, %v1076_v35 }
 0x1de   :  { %1008 = vrot.lane.b32.xlu1 %v975_v56, %s1664_s14 }
 0x1df   :  { %933 = vrot.lane.b32.xlu0 %v2068_v14, %s1663_s0 }
 0x1e2   :  { %573 = vrot.lane.b32.xlu1 %v975_v56, %s1667_s17 }
 0x1e3   :  { %1006 = vrot.lane.b32.xlu0 %v755_v55, %s1664_s14 }
 0x1e6   :  { %646 = vrot.lane.b32.xlu1 %v1821_v51, %s1669_s19 }
 0x1e7   :  { %717 = vrot.lane.b32.xlu0 %v1803_v31, %s1665_s15  ;;  %v1050_v31 = vld [vmem:[#allocation2 + $0xf2] sm:$0xff] }
 0x1e8   :  { %1062 = vst.msk [vmem:[#allocation3 + $0xb8] sm:$0xff] %vm250_vm2, %v1050_v31 }
 0x1ea   :  { %719 = vrot.lane.b32.xlu1 %v684_v58, %s1665_s15 }
 0x1eb   :  { %790 = vrot.lane.b32.xlu0 %v975_v56, %s1666_s16 }
 0x1ee   :  { %792 = vrot.lane.b32.xlu1 %v757_v60, %s1666_s16 }
 0x1ef   :  { %863 = vrot.lane.b32.xlu0 %v1821_v51, %s1668_s18  ;;  %v977_v51 = vld [vmem:[#allocation2 + $0xf1] sm:$0xff] }
 0x1f0   :  { %v629_v61 = vpop.permute.xlu1 %628 }
 0x1f1   :  { %v556_v62 = vpop.permute.xlu0 %555 }
 0x1f2   :  { %590 = vst.msk [vmem:[#allocation3 + $0x20] sm:$0xff] %vm587_vm4, %v556_v62  ;;  %865 = vrot.lane.b32.xlu1 %v830_v50, %s1668_s18 }
 0x1f3   :  { %663 = vst.msk [vmem:[#allocation3 + $0x20] sm:$0xff] %vm660_vm5, %v629_v61  ;;  %571 = vrot.lane.b32.xlu0 %v755_v55, %s1667_s17 }
 0x1f4   :  { %v631_v0 = vpop.permute.xlu1 %630 }
 0x1f5   :  { %v558_v1 = vpop.permute.xlu0 %557 }
 0x1f6   :  { %591 = vst.msk [vmem:[#allocation3 + $0x30] sm:$0xff] %vm587_vm4, %v558_v1  ;;  %939 = vrot.lane.b32.xlu1 %v904_v63, %s1663_s0 }
 0x1f7   :  { %664 = vst.msk [vmem:[#allocation3 + $0x30] sm:$0xff] %vm660_vm5, %v631_v0  ;;  %644 = vrot.lane.b32.xlu0 %v2070_v26, %s1669_s19 }
 0x1f8   :  { %v704_v2 = vpop.permute.xlu1 %703 }
 0x1f9   :  { %v702_v3 = vpop.permute.xlu0 %701  ;;  %737 = vst.msk [vmem:[#allocation3 + $0x30] sm:$0xff] %vm733_vm6, %v704_v2 }
 0x1fa   :  { %736 = vst.msk [vmem:[#allocation3 + $0x20] sm:$0xff] %vm733_vm6, %v702_v3  ;;  %1012 = vrot.lane.b32.xlu1 %v977_v51, %s1664_s14 }
 0x1fb   :  { %937 = vrot.lane.b32.xlu0 %v684_v58, %s1663_s0 }
 0x1fc   :  { %v777_v4 = vpop.permute.xlu1 %776 }
 0x1fd   :  { %810 = vst.msk [vmem:[#allocation3 + $0x30] sm:$0xff] %vm806_vm7, %v777_v4  ;;  %v775_v5 = vpop.permute.xlu0 %774 }
 0x1fe   :  { %809 = vst.msk [vmem:[#allocation3 + $0x20] sm:$0xff] %vm806_vm7, %v775_v5 }
 0x1ff   :  { %1010 = vrot.lane.b32.xlu0 %v757_v60, %s1664_s14 }
 0x200   :  { %v850_v6 = vpop.permute.xlu1 %849 }
 0x201   :  { %883 = vst.msk [vmem:[#allocation3 + $0x30] sm:$0xff] %vm879_vm8, %v850_v6  ;;  %v848_v7 = vpop.permute.xlu0 %847 }
 0x202   :  { %957 = vst.msk [vmem:[#allocation3 + $0x30] sm:$0xff] %vm953_vm9, %v1916_v20 }
 0x203   :  { %882 = vst.msk [vmem:[#allocation3 + $0x20] sm:$0xff] %vm879_vm8, %v848_v7 }
 0x204   :  { %1030 = vst.msk [vmem:[#allocation3 + $0x30] sm:$0xff] %vm1026_vm10, %v1919_v41  ;;  %v566_v8 = vpop.permute.xlu1 %565  ;;  %v1074_v41 = vld [vmem:[#allocation3 + $0x58] sm:$0xff] }
 0x205   :  { %595 = vst.msk [vmem:[#allocation3 + $0x70] sm:$0xff] %vm587_vm4, %v566_v8  ;;  %v922_v9 = vpop.permute.xlu0 %921  ;;  %v1092_v30 = vpack.c.bf16 %v1074_v41, %v1072_v22 }
 0x206   :  { %956 = vst.msk [vmem:[#allocation3 + $0x20] sm:$0xff] %vm953_vm9, %v922_v9 }
 0x208   :  { %v639_v10 = vpop.permute.xlu1 %638 }
 0x209   :  { %668 = vst.msk [vmem:[#allocation3 + $0x70] sm:$0xff] %vm660_vm5, %v639_v10  ;;  %v995_v11 = vpop.permute.xlu0 %994  ;;  %v1084_v10 = vld [vmem:[#allocation3 + $0xa8] sm:$0xff] }
 0x20a   :  { %1029 = vst.msk [vmem:[#allocation3 + $0x20] sm:$0xff] %vm1026_vm10, %v995_v11 }
 0x20b   :  { %v1069_v28 = vld [vmem:[#allocation3 + $0x30] sm:$0xff] }
 0x20c   :  { %v712_v21 = vpop.permute.xlu1 %711 }
 0x20d   :  { %741 = vst.msk [vmem:[#allocation3 + $0x70] sm:$0xff] %vm733_vm6, %v712_v21  ;;  %v560_v20 = vpop.permute.xlu0 %559 }
 0x20e   :  { %592 = vst.msk [vmem:[#allocation3 + $0x40] sm:$0xff] %vm587_vm4, %v560_v20 }
 0x210   :  { %v785_v23 = vpop.permute.xlu1 %784 }
 0x211   :  { %814 = vst.msk [vmem:[#allocation3 + $0x70] sm:$0xff] %vm806_vm7, %v785_v23  ;;  %v633_v24 = vpop.permute.xlu0 %632  ;;  %v1067_v25 = vld [vmem:[#allocation3 + $0x20] sm:$0xff] }
 0x212   :  { %665 = vst.msk [vmem:[#allocation3 + $0x40] sm:$0xff] %vm660_vm5, %v633_v24  ;;  %v1089_v33 = vpack.c.bf16 %v1069_v28, %v1067_v25 }
 0x213   :  { %738 = vst.msk [vmem:[#allocation3 + $0x40] sm:$0xff] %vm733_vm6, %v1921_v42 }
 0x214   :  { %811 = vst.msk [vmem:[#allocation3 + $0x40] sm:$0xff] %vm806_vm7, %v1923_v45  ;;  %1230 = vmatmul.mubr.bf16.vlgmr.msra.gmra.mrb[0].mxu1 %v1089_v33  ;;  %v554_v34 = vpop.permute.xlu1 %553 }
 0x215   :  { %884 = vst.msk [vmem:[#allocation3 + $0x40] sm:$0xff] %vm879_vm8, %v1926_v49  ;;  %v710_v27 = vpop.permute.xlu0 %709  ;;  %1531 = vmatprep.mubr.msk.bf16.mxu1 %vm250_vm2, %v1092_v30 }
 0x216   :  { %589 = vst.msk [vmem:[#allocation3 + $0x10] sm:$0xff] %vm587_vm4, %v554_v34 }
 0x217   :  { %958 = vst.msk [vmem:[#allocation3 + $0x40] sm:$0xff] %vm953_vm9, %v1929_v54 }
 0x218   :  { %740 = vst.msk [vmem:[#allocation3 + $0x60] sm:$0xff] %vm733_vm6, %v710_v27  ;;  %v858_v42 = vpop.permute.xlu1 %857 }
 0x219   :  { %1031 = vst.msk [vmem:[#allocation3 + $0x40] sm:$0xff] %vm1026_vm10, %v1932_v57  ;;  %v783_v45 = vpop.permute.xlu0 %782 }
 0x21a   :  { %887 = vst.msk [vmem:[#allocation3 + $0x70] sm:$0xff] %vm879_vm8, %v858_v42 }
 0x21b   :  { %813 = vst.msk [vmem:[#allocation3 + $0x60] sm:$0xff] %vm806_vm7, %v783_v45 }
 0x21c   :  { %v627_v49 = vpop.permute.xlu1 %626 }
 0x21d   :  { %v856_v32 = vpop.permute.xlu0 %855  ;;  %662 = vst.msk [vmem:[#allocation3 + $0x10] sm:$0xff] %vm660_vm5, %v627_v49 }
 0x21e   :  { %886 = vst.msk [vmem:[#allocation3 + $0x60] sm:$0xff] %vm879_vm8, %v856_v32 }
 0x220   :  { %v1071_v54 = vld [vmem:[#allocation3 + $0x40] sm:$0xff]  ;;  %v932_v26 = vpop.permute.xlu1 %931 }
 0x221   :  { %v1091_v14 = vpack.c.bf16 %v1073_v13, %v1071_v54  ;;  %v930_v57 = vpop.permute.xlu0 %929  ;;  %961 = vst.msk [vmem:[#allocation3 + $0x70] sm:$0xff] %vm953_vm9, %v932_v26 }
 0x222   :  { %960 = vst.msk [vmem:[#allocation3 + $0x60] sm:$0xff] %vm953_vm9, %v930_v57 }
 0x223   :  { %1238 = vmatmul.mubr.bf16.gmra.mrb[4].mxu1 %v1091_v14 }
 0x224   :  { %1532 = vmatprep.mubr.msk.bf16.mxu1 %vm250_vm2, %v1094_v15  ;;  %v700_v29 = vpop.permute.xlu1 %699 }
 0x225   :  { %v698_v16 = vpop.permute.xlu0 %697  ;;  %735 = vst.msk [vmem:[#allocation3 + $0x10] sm:$0xff] %vm733_vm6, %v700_v29 }
 0x226   :  { %734 = vst.msk [vmem:[#allocation3] sm:$0xff] %vm733_vm6, %v698_v16 }
 0x228   :  { %v1005_v36 = vpop.permute.xlu1 %1004 }
 0x229   :  { %v1003_v17 = vpop.permute.xlu0 %1002  ;;  %1034 = vst.msk [vmem:[#allocation3 + $0x70] sm:$0xff] %vm1026_vm10, %v1005_v36 }
 0x22a   :  { %1033 = vst.msk [vmem:[#allocation3 + $0x60] sm:$0xff] %vm1026_vm10, %v1003_v17 }
 0x22c   :  { %v773_v37 = vpop.permute.xlu1 %772 }
 0x22d   :  { %v771_v18 = vpop.permute.xlu0 %770  ;;  %808 = vst.msk [vmem:[#allocation3 + $0x10] sm:$0xff] %vm806_vm7, %v773_v37 }
 0x22e   :  { %807 = vst.msk [vmem:[#allocation3] sm:$0xff] %vm806_vm7, %v771_v18 }
 0x230   :  { %v570_v19 = vpop.permute.xlu1 %569  ;;  %v1077_v38 = vld [vmem:[#allocation3 + $0x70] sm:$0xff] }
 0x231   :  { %v568_v43 = vpop.permute.xlu0 %567  ;;  %597 = vst.msk [vmem:[#allocation3 + $0x90] sm:$0xff] %vm587_vm4, %v570_v19  ;;  %v1075_v44 = vld [vmem:[#allocation3 + $0x60] sm:$0xff] }
 0x232   :  { %596 = vst.msk [vmem:[#allocation3 + $0x80] sm:$0xff] %vm587_vm4, %v568_v43  ;;  %v1093_v46 = vpack.c.bf16 %v1077_v38, %v1075_v44 }
 0x234   :  { %1244 = vmatmul.mubr.bf16.gmra.mrb[8].mxu1 %v1093_v46  ;;  %v846_v48 = vpop.permute.xlu1 %845 }
 0x235   :  { %v844_v50 = vpop.permute.xlu0 %843  ;;  %1533 = vmatprep.mubr.msk.bf16.mxu1 %vm250_vm2, %v1096_v47  ;;  %881 = vst.msk [vmem:[#allocation3 + $0x10] sm:$0xff] %vm879_vm8, %v846_v48 }
 0x236   :  { %880 = vst.msk [vmem:[#allocation3] sm:$0xff] %vm879_vm8, %v844_v50 }
 0x238   :  { %v643_v52 = vpop.permute.xlu1 %642 }
 0x239   :  { %v641_v53 = vpop.permute.xlu0 %640  ;;  %670 = vst.msk [vmem:[#allocation3 + $0x90] sm:$0xff] %vm660_vm5, %v643_v52 }
 0x23a   :  { %669 = vst.msk [vmem:[#allocation3 + $0x80] sm:$0xff] %vm660_vm5, %v641_v53 }
 0x23c   :  { %v920_v55 = vpop.permute.xlu1 %919 }
 0x23d   :  { %v918_v56 = vpop.permute.xlu0 %917  ;;  %955 = vst.msk [vmem:[#allocation3 + $0x10] sm:$0xff] %vm953_vm9, %v920_v55 }
 0x23e   :  { %954 = vst.msk [vmem:[#allocation3] sm:$0xff] %vm953_vm9, %v918_v56 }
 0x240   :  { %v716_v58 = vpop.permute.xlu1 %715 }
 0x241   :  { %v714_v60 = vpop.permute.xlu0 %713  ;;  %743 = vst.msk [vmem:[#allocation3 + $0x90] sm:$0xff] %vm733_vm6, %v716_v58 }
 0x242   :  { %742 = vst.msk [vmem:[#allocation3 + $0x80] sm:$0xff] %vm733_vm6, %v714_v60 }
 0x244   :  { %v993_v61 = vpop.permute.xlu1 %992 }
 0x245   :  { %v991_v62 = vpop.permute.xlu0 %990  ;;  %1028 = vst.msk [vmem:[#allocation3 + $0x10] sm:$0xff] %vm1026_vm10, %v993_v61 }
 0x246   :  { %1027 = vst.msk [vmem:[#allocation3] sm:$0xff] %vm1026_vm10, %v991_v62 }
 0x248   :  { %v789_v31 = vpop.permute.xlu1 %788 }
 0x249   :  { %v787_v63 = vpop.permute.xlu0 %786  ;;  %816 = vst.msk [vmem:[#allocation3 + $0x90] sm:$0xff] %vm806_vm7, %v789_v31 }
 0x24a   :  { %815 = vst.msk [vmem:[#allocation3 + $0x80] sm:$0xff] %vm806_vm7, %v787_v63 }
 0x24c   :  { %v862_v0 = vpop.permute.xlu1 %861  ;;  %v1065_v1 = vld [vmem:[#allocation3 + $0x10] sm:$0xff] }
 0x24d   :  { %v860_v51 = vpop.permute.xlu0 %859  ;;  %889 = vst.msk [vmem:[#allocation3 + $0x90] sm:$0xff] %vm879_vm8, %v862_v0  ;;  %v1063_v2 = vld [vmem:[#allocation3] sm:$0xff] }
 0x24e   :  { %888 = vst.msk [vmem:[#allocation3 + $0x80] sm:$0xff] %vm879_vm8, %v860_v51  ;;  %v1087_v3 = vpack.c.bf16 %v1065_v1, %v1063_v2 }
 0x24f   :  { %963 = vst.msk [vmem:[#allocation3 + $0x90] sm:$0xff] %vm953_vm9, %v2188_v59  ;;  %v1086_v59 = vld [vmem:[#allocation3 + $0xb8] sm:$0xff] }
 0x250   :  { %1222 = vmatmul.mubr.bf16.vlgmr.msra.gmra.mrb[16].mxu0 %v1087_v3  ;;  %v1009_v4 = vpop.permute.xlu1 %1008  ;;  %v1098_v41 = vpack.c.bf16 %v1086_v59, %v1084_v10 }
 0x251   :  { %v934_v5 = vpop.permute.xlu0 %933  ;;  %1036 = vst.msk [vmem:[#allocation3 + $0x90] sm:$0xff] %vm1026_vm10, %v1009_v4 }
 0x252   :  { %962 = vst.msk [vmem:[#allocation3 + $0x80] sm:$0xff] %vm953_vm9, %v934_v5 }
 0x254   :  { %v574_v6 = vpop.permute.xlu1 %573 }
 0x255   :  { %v1007_v7 = vpop.permute.xlu0 %1006  ;;  %599 = vst.msk [vmem:[#allocation3 + $0xb0] sm:$0xff] %vm587_vm4, %v574_v6 }
 0x256   :  { %1035 = vst.msk [vmem:[#allocation3 + $0x80] sm:$0xff] %vm1026_vm10, %v1007_v7 }
 0x258   :  { %v647_v8 = vpop.permute.xlu1 %646  ;;  %v1081_v11 = vld [vmem:[#allocation3 + $0x90] sm:$0xff] }
 0x259   :  { %v718_v9 = vpop.permute.xlu0 %717  ;;  %672 = vst.msk [vmem:[#allocation3 + $0xb0] sm:$0xff] %vm660_vm5, %v647_v8 }
 0x25c   :  { %v720_v21 = vpop.permute.xlu1 %719 }
 0x25d   :  { %v791_v20 = vpop.permute.xlu0 %790  ;;  %v1079_v22 = vld [vmem:[#allocation3 + $0x80] sm:$0xff]  ;;  %745 = vst.msk [vmem:[#allocation3 + $0xb0] sm:$0xff] %vm733_vm6, %v720_v21 }
 0x25e   :  { %v1095_v23 = vpack.c.bf16 %v1081_v11, %v1079_v22 }
 0x260   :  { %1252 = vmatmul.mubr.bf16.gmra.mrb[12].mxu1 %v1095_v23  ;;  %v793_v24 = vpop.permute.xlu1 %792 }
 0x261   :  { %v864_v25 = vpop.permute.xlu0 %863  ;;  %818 = vst.msk [vmem:[#allocation3 + $0xb0] sm:$0xff] %vm806_vm7, %v793_v24  ;;  %1534 = vmatprep.mubr.msk.bf16.mxu1 %vm250_vm2, %v1098_v41 }
 0x264   :  { %v866_v28 = vpop.permute.xlu1 %865 }
 0x265   :  { %v572_v30 = vpop.permute.xlu0 %571  ;;  %891 = vst.msk [vmem:[#allocation3 + $0xb0] sm:$0xff] %vm879_vm8, %v866_v28 }
 0x266   :  { %598 = vst.msk [vmem:[#allocation3 + $0xa0] sm:$0xff] %vm587_vm4, %v572_v30 }
 0x268   :  { %v940_v33 = vpop.permute.xlu1 %939 }
 0x269   :  { %v645_v34 = vpop.permute.xlu0 %644  ;;  %965 = vst.msk [vmem:[#allocation3 + $0xb0] sm:$0xff] %vm953_vm9, %v940_v33 }
 0x26a   :  { %671 = vst.msk [vmem:[#allocation3 + $0xa0] sm:$0xff] %vm660_vm5, %v645_v34 }
 0x26b   :  { %744 = vst.msk [vmem:[#allocation3 + $0xa0] sm:$0xff] %vm733_vm6, %v718_v9 }
 0x26c   :  { %817 = vst.msk [vmem:[#allocation3 + $0xa0] sm:$0xff] %vm806_vm7, %v791_v20  ;;  %v1013_v27 = vpop.permute.xlu1 %1012 }
 0x26d   :  { %890 = vst.msk [vmem:[#allocation3 + $0xa0] sm:$0xff] %vm879_vm8, %v864_v25  ;;  %v938_v42 = vpop.permute.xlu0 %937 }
 0x26e   :  { %1038 = vst.msk [vmem:[#allocation3 + $0xb0] sm:$0xff] %vm1026_vm10, %v1013_v27 }
 0x26f   :  { %964 = vst.msk [vmem:[#allocation3 + $0xa0] sm:$0xff] %vm953_vm9, %v938_v42 }
 0x271   :  { %v1011_v45 = vpop.permute.xlu0 %1010 }
 0x272   :  { %1037 = vst.msk [vmem:[#allocation3 + $0xa0] sm:$0xff] %vm1026_vm10, %v1011_v45 }
 0x275   :  { %v1085_v49 = vld [vmem:[#allocation3 + $0xb0] sm:$0xff] }
 0x279   :  { %v1083_v32 = vld [vmem:[#allocation3 + $0xa0] sm:$0xff] }
 0x27a   :  { %v1097_v35 = vpack.c.bf16 %v1085_v49, %v1083_v32 }
 0x27c   :  { %1260 = vmatmul.mubr.bf16.gmra.mrb[16].mxu1 %v1097_v35 }
 0x2e7   :  { %v2289_v12 = vpop.f32.mrb[0].mxu1 }
 0x2e8   :  { %v1233_v54 = vpop.f32.mrb[1].mxu1  ;;  %v1281_v61 = vsel %vm1266_vm15, %v2289_v12, 0.0 }
 0x2e9   :  { %v2291_v13 = vpop.f32.mrb[2].mxu1  ;;  %v1282_v31 = vrot.slane %v1281_v61, 4 }
 0x2ea   :  { %v1236_v14 = vpop.f32.mrb[3].mxu1  ;;  %v1288_v62 = vsel %vm1266_vm15, %v2291_v13, 0.0 }
 0x2eb   :  { %v1289_v63 = vrot.slane %v1288_v62, 4  ;;  %v1283_v0 = vadd.f32 %v1282_v31, %v1281_v61 }
 0x2ed   :  { %v1290_v1 = vadd.f32 %v1289_v63, %v1288_v62  ;;  %v1284_v4 = vrot.slane %v1283_v0, 2 }
 0x2ef   :  { %v1291_v9 = vrot.slane %v1290_v1, 2  ;;  %v1285_v11 = vadd.f32 %v1284_v4, %v1283_v0 }
 0x2f1   :  { %v1292_v22 = vadd.f32 %v1291_v9, %v1290_v1  ;;  %v1286_v24 = vrot.slane %v1285_v11, 1 }
 0x2f3   :  { %v1293_v30 = vrot.slane %v1292_v22, 1  ;;  %v1287_v27 = vadd.f32 %v1286_v24, %v1285_v11 }
 0x2f5   :  { %v1294_v45 = vadd.f32 %v1293_v30, %v1292_v22 }
 0x2f6   :  { %v1239_v26 = vpop.f32.mrb[4].mxu1 }
 0x2f7   :  { %v1240_v15 = vpop.f32.mrb[5].mxu1 }
 0x2f8   :  { %v1241_v57 = vpop.f32.mrb[6].mxu1  ;;  %v1326_v15 = vsel %vm250_vm2, %v1287_v27, 0.0 }
 0x2f9   :  { %v1242_v29 = vpop.f32.mrb[7].mxu1 }
 0x307   :  { %v2293_v16 = vpop.f32.mrb[8].mxu1 }
 0x308   :  { %v1295_v36 = vsel %vm1266_vm15, %v2293_v16, 0.0  ;;  %v1247_v17 = vpop.f32.mrb[9].mxu1 }
 0x309   :  { %v1296_v37 = vrot.slane %v1295_v36, 4  ;;  %v2297_v18 = vpop.f32.mrb[10].mxu1 }
 0x30a   :  { %v1302_v19 = vsel %vm1266_vm15, %v2297_v18, 0.0  ;;  %v1250_v38 = vpop.f32.mrb[11].mxu1 }
 0x30b   :  { %v1297_v39 = vadd.f32 %v1296_v37, %v1295_v36  ;;  %v1303_v40 = vrot.slane %v1302_v19, 4 }
 0x30d   :  { %v1298_v43 = vrot.slane %v1297_v39, 2  ;;  %v1304_v44 = vadd.f32 %v1303_v40, %v1302_v19  ;;  %v1328_v19 = vsel %vm250_vm2, %v1294_v45, 0.0 }
 0x30f   :  { %v1299_v46 = vadd.f32 %v1298_v43, %v1297_v39  ;;  %v1305_v47 = vrot.slane %v1304_v44, 2 }
 0x311   :  { %v1300_v48 = vrot.slane %v1299_v46, 1  ;;  %v1306_v50 = vadd.f32 %v1305_v47, %v1304_v44 }
 0x313   :  { %v1301_v52 = vadd.f32 %v1300_v48, %v1299_v46  ;;  %v1307_v53 = vrot.slane %v1306_v50, 1 }
 0x315   :  { %v1308_v55 = vadd.f32 %v1307_v53, %v1306_v50  ;;  %v1330_v56 = vsel %vm250_vm2, %v1301_v52, 0.0 }
 0x317   :  { %v1331_v58 = vsel %vm250_vm2, %v1308_v55, 0.0 }
 0x318   :  { %v1332_v60 = vadd.f32 %v1331_v58, %v1330_v56 }
 0x323   :  { %v1223_v51 = vpop.f32.mrb[16].mxu0 }
 0x324   :  { %v1267_v2 = vsel %vm1266_vm15, %v1223_v51, 0.0  ;;  %v1225_v3 = vpop.f32.mrb[17].mxu0 }
 0x325   :  { %v1268_v5 = vrot.slane %v1267_v2, 4  ;;  %v1226_v6 = vpop.f32.mrb[18].mxu0 }
 0x326   :  { %v1274_v7 = vsel %vm1266_vm15, %v1226_v6, 0.0  ;;  %v1228_v8 = vpop.f32.mrb[19].mxu0 }
 0x327   :  { %v1269_v10 = vadd.f32 %v1268_v5, %v1267_v2  ;;  %v1275_v59 = vrot.slane %v1274_v7, 4 }
 0x329   :  { %v1270_v21 = vrot.slane %v1269_v10, 2  ;;  %v1276_v20 = vadd.f32 %v1275_v59, %v1274_v7 }
 0x32b   :  { %v1271_v41 = vadd.f32 %v1270_v21, %v1269_v10  ;;  %v1277_v23 = vrot.slane %v1276_v20, 2 }
 0x32d   :  { %v1272_v25 = vrot.slane %v1271_v41, 1  ;;  %v1278_v28 = vadd.f32 %v1277_v23, %v1276_v20 }
 0x32f   :  { %v1273_v33 = vadd.f32 %v1272_v25, %v1271_v41  ;;  %v1279_v34 = vrot.slane %v1278_v28, 1 }
 0x331   :  { %v1280_v42 = vadd.f32 %v1279_v34, %v1278_v28  ;;  %v1323_v49 = vsel %vm250_vm2, %v1273_v33, 0.0 }
 0x333   :  { %v1324_v32 = vsel %vm250_vm2, %v1280_v42, 0.0  ;;  %v1253_v35 = vpop.f32.mrb[12].mxu1 }
 0x334   :  { %v1325_v54 = vadd.f32 %v1324_v32, %v1323_v49  ;;  %v1309_v14 = vsel %vm1266_vm15, %v1253_v35, 0.0  ;;  %v1255_v26 = vpop.f32.mrb[13].mxu1 }
 0x335   :  { %v1310_v57 = vrot.slane %v1309_v14, 4  ;;  %v1256_v29 = vpop.f32.mrb[14].mxu1 }
 0x336   :  { %v1327_v36 = vadd.f32 %v1326_v15, %v1325_v54  ;;  %v1316_v17 = vsel %vm1266_vm15, %v1256_v29, 0.0  ;;  %v1258_v37 = vpop.f32.mrb[15].mxu1 }
 0x337   :  { %v1311_v38 = vadd.f32 %v1310_v57, %v1309_v14  ;;  %v1317_v39 = vrot.slane %v1316_v17, 4 }
 0x338   :  { %v1329_v40 = vadd.f32 %v1328_v19, %v1327_v36 }
 0x339   :  { %v1312_v43 = vrot.slane %v1311_v38, 2  ;;  %v1318_v44 = vadd.f32 %v1317_v39, %v1316_v17 }
 0x33a   :  { %v1337_v31 = vsel %vm250_vm2, %v1329_v40, 0.0 }
 0x33b   :  { %v1313_v46 = vadd.f32 %v1312_v43, %v1311_v38  ;;  %v1319_v47 = vrot.slane %v1318_v44, 2 }
 0x33d   :  { %v1314_v48 = vrot.slane %v1313_v46, 1  ;;  %v1320_v50 = vadd.f32 %v1319_v47, %v1318_v44 }
 0x33f   :  { %v1315_v52 = vadd.f32 %v1314_v48, %v1313_v46  ;;  %v1321_v53 = vrot.slane %v1320_v50, 1 }
 0x341   :  { %v1333_v55 = vsel %vm250_vm2, %v1315_v52, 0.0  ;;  %v1322_v56 = vadd.f32 %v1321_v53, %v1320_v50 }
 0x342   :  { %v1334_v58 = vadd.f32 %v1333_v55, %v1332_v60 }
 0x343   :  { %v1335_v61 = vsel %vm250_vm2, %v1322_v56, 0.0 }
 0x344   :  { %v1336_v62 = vadd.f32 %v1335_v61, %v1334_v58 }
 0x346   :  { %v1338_v63 = vsel %vm250_vm2, %v1336_v62, 0.0 }
 0x347   :  { %v1339_v0 = vadd.f32 %v1338_v63, %v1337_v31 }
 0x349   :  { %v1340_v1 = vmul.f32 0.03125, %v1339_v0 }
 0x34b   :  { %v2319_v2 = vsub.f32 %v1223_v51, %v1340_v1  ;;  %v2321_v3 = vsub.f32 %v1226_v6, %v1340_v1  ;;  %v2324_v4 = vsub.f32 %v2289_v12, %v1340_v1  ;;  %v2327_v5 = vsub.f32 %v2291_v13, %v1340_v1 }
 0x34c   :  { %v2330_v60 = vsub.f32 %v2293_v16, %v1340_v1  ;;  %v2333_v7 = vsub.f32 %v2297_v18, %v1340_v1  ;;  %v2335_v8 = vsub.f32 %v1253_v35, %v1340_v1  ;;  %v2337_v9 = vsub.f32 %v1256_v29, %v1340_v1 }
 0x34d   :  { %v1349_v51 = vmul.f32 %v2319_v2, %v2319_v2  ;;  %v1350_v12 = vmul.f32 %v2321_v3, %v2321_v3  ;;  %v1351_v13 = vmul.f32 %v2324_v4, %v2324_v4  ;;  %v1352_v16 = vmul.f32 %v2327_v5, %v2327_v5 }
 0x34e   :  { %v1353_v18 = vmul.f32 %v2330_v60, %v2330_v60  ;;  %v1354_v6 = vmul.f32 %v2333_v7, %v2333_v7  ;;  %v1355_v10 = vmul.f32 %v2335_v8, %v2335_v8  ;;  %v1356_v59 = vmul.f32 %v2337_v9, %v2337_v9 }
 0x34f   :  { %v1357_v11 = vsel %vm1266_vm15, %v1349_v51, 0.0  ;;  %v1364_v21 = vsel %vm1266_vm15, %v1350_v12, 0.0  ;;  %v1371_v20 = vsel %vm1266_vm15, %v1351_v13, 0.0  ;;  %v1378_v22 = vsel %vm1266_vm15, %v1352_v16, 0.0  ;;  %v1261_v41 = vpop.f32.mrb[16].mxu1 }
 0x350   :  { %v1358_v23 = vrot.slane %v1357_v11, 4  ;;  %v1365_v24 = vrot.slane %v1364_v21, 4  ;;  %v1372_v25 = vrot.slane %v1371_v20, 4  ;;  %v1379_v28 = vrot.slane %v1378_v22, 4  ;;  %v1262_v30 = vpop.f32.mrb[17].mxu1 }
 0x351   :  { %v1385_v33 = vsel %vm1266_vm15, %v1353_v18, 0.0  ;;  %v1392_v34 = vsel %vm1266_vm15, %v1354_v6, 0.0  ;;  %v1399_v27 = vsel %vm1266_vm15, %v1355_v10, 0.0  ;;  %v1406_v42 = vsel %vm1266_vm15, %v1356_v59, 0.0  ;;  %v1263_v45 = vpop.f32.mrb[18].mxu1 }
 0x352   :  { %v1359_v49 = vadd.f32 %v1358_v23, %v1357_v11  ;;  %v1366_v32 = vadd.f32 %v1365_v24, %v1364_v21  ;;  %v1373_v35 = vadd.f32 %v1372_v25, %v1371_v20  ;;  %v1380_v54 = vadd.f32 %v1379_v28, %v1378_v22  ;;  %v1264_v14 = vpop.f32.mrb[19].mxu1 }
 0x353   :  { %v1386_v26 = vrot.slane %v1385_v33, 4  ;;  %v1393_v15 = vrot.slane %v1392_v34, 4  ;;  %v1400_v57 = vrot.slane %v1399_v27, 4  ;;  %v1407_v29 = vrot.slane %v1406_v42, 4 }
 0x354   :  { %v1360_v36 = vrot.slane %v1359_v49, 2  ;;  %v1367_v17 = vrot.slane %v1366_v32, 2  ;;  %v1374_v37 = vrot.slane %v1373_v35, 2  ;;  %v1381_v19 = vrot.slane %v1380_v54, 2 }
 0x355   :  { %v1387_v38 = vadd.f32 %v1386_v26, %v1385_v33  ;;  %v1394_v39 = vadd.f32 %v1393_v15, %v1392_v34  ;;  %v1401_v40 = vadd.f32 %v1400_v57, %v1399_v27  ;;  %v1408_v43 = vadd.f32 %v1407_v29, %v1406_v42 }
 0x356   :  { %v1361_v44 = vadd.f32 %v1360_v36, %v1359_v49  ;;  %v1368_v46 = vadd.f32 %v1367_v17, %v1366_v32  ;;  %v1375_v47 = vadd.f32 %v1374_v37, %v1373_v35  ;;  %v1382_v48 = vadd.f32 %v1381_v19, %v1380_v54 }
 0x357   :  { %v1388_v50 = vrot.slane %v1387_v38, 2  ;;  %v1395_v52 = vrot.slane %v1394_v39, 2  ;;  %v1402_v53 = vrot.slane %v1401_v40, 2  ;;  %v1409_v55 = vrot.slane %v1408_v43, 2 }
 0x358   :  { %v1362_v56 = vrot.slane %v1361_v44, 1  ;;  %v1369_v58 = vrot.slane %v1368_v46, 1  ;;  %v1376_v61 = vrot.slane %v1375_v47, 1  ;;  %v1383_v62 = vrot.slane %v1382_v48, 1 }
 0x359   :  { %v1389_v31 = vadd.f32 %v1388_v50, %v1387_v38  ;;  %v1396_v63 = vadd.f32 %v1395_v52, %v1394_v39  ;;  %v1403_v0 = vadd.f32 %v1402_v53, %v1401_v40  ;;  %v1410_v1 = vadd.f32 %v1409_v55, %v1408_v43 }
 0x35a   :  { %v1363_v51 = vadd.f32 %v1362_v56, %v1361_v44  ;;  %v1370_v12 = vadd.f32 %v1369_v58, %v1368_v46  ;;  %v1377_v13 = vadd.f32 %v1376_v61, %v1375_v47  ;;  %v1384_v21 = vadd.f32 %v1383_v62, %v1382_v48 }
 0x35b   :  { %v1390_v16 = vrot.slane %v1389_v31, 1  ;;  %v1397_v18 = vrot.slane %v1396_v63, 1  ;;  %v1404_v6 = vrot.slane %v1403_v0, 1  ;;  %v1411_v10 = vrot.slane %v1410_v1, 1 }
 0x35c   :  { %v1413_v59 = vsel %vm250_vm2, %v1363_v51, 0.0  ;;  %v1414_v11 = vsel %vm250_vm2, %v1370_v12, 0.0  ;;  %v1416_v25 = vsel %vm250_vm2, %v1377_v13, 0.0  ;;  %v1418_v27 = vsel %vm250_vm2, %v1384_v21, 0.0 }
 0x35d   :  { %v1391_v20 = vadd.f32 %v1390_v16, %v1389_v31  ;;  %v1398_v22 = vadd.f32 %v1397_v18, %v1396_v63  ;;  %v1405_v41 = vadd.f32 %v1404_v6, %v1403_v0  ;;  %v1415_v23 = vadd.f32 %v1414_v11, %v1413_v59 }
 0x35e   :  { %v1412_v24 = vadd.f32 %v1411_v10, %v1410_v1 }
 0x35f   :  { %v1420_v28 = vsel %vm250_vm2, %v1391_v20, 0.0  ;;  %v1421_v30 = vsel %vm250_vm2, %v1398_v22, 0.0  ;;  %v1417_v33 = vadd.f32 %v1416_v25, %v1415_v23  ;;  %v1423_v42 = vsel %vm250_vm2, %v1405_v41, 0.0 }
 0x360   :  { %v1422_v34 = vadd.f32 %v1421_v30, %v1420_v28  ;;  %v1425_v32 = vsel %vm250_vm2, %v1412_v24, 0.0 }
 0x361   :  { %v1419_v45 = vadd.f32 %v1418_v27, %v1417_v33 }
 0x362   :  { %v1424_v49 = vadd.f32 %v1423_v42, %v1422_v34 }
 0x363   :  { %v1427_v54 = vsel %vm250_vm2, %v1419_v45, 0.0 }
 0x364   :  { %v1426_v35 = vadd.f32 %v1425_v32, %v1424_v49 }
 0x366   :  { %v1428_v14 = vsel %vm250_vm2, %v1426_v35, 0.0 }
 0x367   :  { %v1429_v26 = vadd.f32 %v1428_v14, %v1427_v54 }
 0x369   :  { %v1430_v15 = vmul.f32 0.03125, %v1429_v26 }
 0x36b   :  { %v1431_v57 = vadd.f32 1e-05, %v1430_v15 }
 0x36d   :  { %1636 = vrsqrt.f32 %v1431_v57 }
 0x377   :  { %v1637_v29 = vpop.eup %1636 }
 0x378   :  { %v1433_v36 = vmul.f32 %v1637_v29, %v2319_v2  ;;  %v1434_v17 = vmul.f32 %v1637_v29, %v2321_v3  ;;  %v1435_v37 = vmul.f32 %v1637_v29, %v2324_v4  ;;  %v1436_v19 = vmul.f32 %v1637_v29, %v2327_v5 }
 0x379   :  { %v1437_v38 = vmul.f32 %v1637_v29, %v2330_v60  ;;  %v1438_v39 = vmul.f32 %v1637_v29, %v2333_v7  ;;  %v1439_v40 = vmul.f32 %v1637_v29, %v2335_v8  ;;  %v1440_v43 = vmul.f32 %v1637_v29, %v2337_v9 }
 0x37a   :  { %v1441_v44 = vmax.f32 %v1433_v36, 0.0  ;;  %v1442_v46 = vmax.f32 %v1434_v17, 0.0  ;;  %v1443_v47 = vmax.f32 %v1435_v37, 0.0  ;;  %v1444_v48 = vmax.f32 %v1436_v19, 0.0 }
 0x37b   :  { %v1445_v50 = vmax.f32 %v1437_v38, 0.0  ;;  %v1446_v2 = vmax.f32 %v1438_v39, 0.0  ;;  %v1447_v52 = vmax.f32 %v1439_v40, 0.0  ;;  %v1448_v3 = vmax.f32 %v1440_v43, 0.0 }
 0x37c   :  { %v1450_v53 = vadd.f32 %v1444_v48, %v1443_v47  ;;  %v1449_v4 = vadd.f32 %v1442_v46, %v1441_v44 }
 0x37d   :  { %v1451_v55 = vadd.f32 %v1446_v2, %v1445_v50  ;;  %v1452_v5 = vadd.f32 %v1448_v3, %v1447_v52 }
 0x37e   :  { %v1458_v56 = vrot.slane %v1450_v53, 1  ;;  %v1457_v60 = vrot.slane %v1449_v4, 1 }
 0x37f   :  { %v1459_v58 = vrot.slane %v1451_v55, 1  ;;  %v1460_v7 = vrot.slane %v1452_v5, 1 }
 0x380   :  { %v1465_v61 = vadd.f32 %v1457_v60, %v1449_v4  ;;  %v1466_v8 = vadd.f32 %v1458_v56, %v1450_v53 }
 0x381   :  { %v1467_v9 = vadd.f32 %v1459_v58, %v1451_v55  ;;  %v1468_v62 = vadd.f32 %v1460_v7, %v1452_v5 }
 0x382   :  { %v1469_v31 = vmul.f32 0.25, %v1465_v61  ;;  %v1470_v63 = vmul.f32 0.25, %v1466_v8 }
 0x383   :  { %v1471_v0 = vmul.f32 0.25, %v1467_v9  ;;  %v1472_v1 = vmul.f32 0.25, %v1468_v62 }
 0x384   :  { %1473 = vst.msk [vmem:[#allocation4] sm:$0x1] %vm467_vm11, %v1469_v31  ;;  %1474 = vst.msk [vmem:[#allocation4 + $0x2] sm:$0x1] %vm467_vm11, %v1470_v63 }
 0x385   :  { %1477 = vst.msk [vmem:[#allocation4 - $0x1] sm:$0x4] %vm476_vm12, %v1469_v31  ;;  %1478 = vst.msk [vmem:[#allocation4 + $0x1] sm:$0x4] %vm476_vm12, %v1470_v63 }
 0x386   :  { %1476 = vst.msk [vmem:[#allocation4 + $0x6] sm:$0x1] %vm467_vm11, %v1472_v1  ;;  %1475 = vst.msk [vmem:[#allocation4 + $0x4] sm:$0x1] %vm467_vm11, %v1471_v0 }
 0x387   :  { %1480 = vst.msk [vmem:[#allocation4 + $0x5] sm:$0x4] %vm476_vm12, %v1472_v1  ;;  %1479 = vst.msk [vmem:[#allocation4 + $0x3] sm:$0x4] %vm476_vm12, %v1471_v0 }
 0x388   :  { %1649 = shalt.err (!%p1646_p4)
}
 0x389   :  { %s1650_s0 = scalar_lea.hbm %s2406_s3, 128 }
 0x38a   :  { %p1651_p5 = scmp.ne.s32.totalorder %s2406_s3, %s1650_s0  ;;  %p1654_p6 = scmp.lt.u32.totalorder %s1650_s0, %s2406_s3 }
 0x38c   :  { %p1656_p7 = pnand %p1654_p6, %p1651_p5 }
 0x38e   :  { %1659 = shalt.err (!%p1656_p7)
}
 0x38f   :  { %s1672_s18 = smov 2  }
 0x390   :  { %1492 = dma.vmem_to_hbm [thread:$0]  %s1487_s10, 128, %s2406_s3, [#allocation5], %s1669_s19, %s1669_s19, %s1672_s18  }
 0x391   :  { %1660 = dma.done.wait [#allocation5], 128  }
 0x392   :  { %1661 = vsyncadd [#allocation5], 4294967168 }
 0x393   :  { %1496 = vsyncpa [#allocation5], 1 }

</bundles_post_ra>
